<compile_context>
chip_gen: v5e
topology: v5e:2x2
jax: 0.10.0
libtpu: 0.0.40
codegen_flags: <defaults>
</compile_context>

<pallas_src>
import jax
import jax.numpy as jnp
from jax import lax
from jax.experimental import pallas as pl
from jax.experimental.pallas import tpu as pltpu


def _round_up(x, m):
    return ((x + m - 1) // m) * m


def _time_chunk(T, target=16):
    """Largest divisor of T that is <= target (trace-time helper, keeps pairs exact)."""
    for c in range(min(T, target), 0, -1):
        if T % c == 0:
            return c
    return 1


def _context_posterior_kernel(seq_ref,    # (T, Bb, D)     bf16
                              wih_ref,    # (D, 8H)        bf16  gate-major [i|f|o|g], fwd|bwd
                              whh_ref,    # (2H, 8H)       bf16  block-diag, gate-major [i|f|o|g]
                              bias_ref,   # (1, 8H)        f32   (b_ih + b_hh, both dirs)
                              wlin_ref,   # (2H, O_pad)    f32   (1/T already folded in)
                              blin_ref,   # (1, O_pad)     f32
                              out_ref,    # (Bb, O_pad)    f32
                              gin_ref):   # scratch (T, Bb, 8H), MERGED fwd/bwd projections
    T, Bb, D = seq_ref.shape
    G = wih_ref.shape[1]          # 8H
    H2 = whh_ref.shape[0]         # 2H
    H = H2 // 2

    # ---- loop-invariant values ----
    wih = wih_ref[...]
    bias = bias_ref[...]
    lane = lax.broadcasted_iota(jnp.int32, (Bb, G), 1)
    is_bwd = (lane % H2) >= H     # backward-direction lanes inside each 2H gate block

    # ---- Stage 1: chunk-paired input projection, merged & stored off the serial path.
    # For output row t: forward lanes hold x[t] @ Wih_f, backward lanes hold
    # x[T-1-t] @ Wih_b (bias folded in), so the recurrence needs ONE load per step.
    tc = _time_chunk(T)
    nc = T // tc
    for p in range((nc + 1) // 2):
        a0 = p * tc
        b0 = T - (p + 1) * tc
        xa = seq_ref[a0:a0 + tc].reshape(tc * Bb, D)
        pa = (jnp.dot(xa, wih, preferred_element_type=jnp.float32)
              + bias).reshape(tc, Bb, G)
        if b0 == a0:                       # middle chunk (odd chunk count)
            pb = pa
        else:
            xb = seq_ref[b0:b0 + tc].reshape(tc * Bb, D)
            pb = (jnp.dot(xb, wih, preferred_element_type=jnp.float32)
                  + bias).reshape(tc, Bb, G)
        for i in range(tc):                # full-row, lane-dense stores
            gin_ref[a0 + i] = jnp.where(is_bwd, pb[tc - 1 - i], pa[i]).astype(gin_ref.dtype)
            if b0 != a0:
                gin_ref[b0 + i] = jnp.where(is_bwd, pa[tc - 1 - i], pb[i]).astype(gin_ref.dtype)

    # ---- Stage 2: fused fwd+bwd recurrence, h = [h_f | h_b], one block-diag matmul/step.
    whh = whh_ref[...]
    S = 3 * H2                             # sigmoid gates (i, f, o) are the first 6H lanes

    def step(t, carry):
        h, c, acc = carry                                                  # (Bb, 2H) f32
        gates = (gin_ref[t].astype(jnp.float32)
                 + jnp.dot(h.astype(jnp.bfloat16), whh,
                           preferred_element_type=jnp.float32))            # (Bb, 8H) f32
        sig = jax.nn.sigmoid(gates[:, :S])                                 # i | f | o
        g_g = jnp.tanh(gates[:, S:])                                       # candidate
        i_g = sig[:, 0:H2]
        f_g = sig[:, H2:2 * H2]
        o_g = sig[:, 2 * H2:3 * H2]
        c_new = f_g * c + i_g * g_g
        h_new = o_g * jnp.tanh(c_new)
        return h_new, c_new, acc + h_new

    zeros = jnp.zeros((Bb, H2), jnp.float32)
    unroll = True if T <= 8 else 2         # modest unroll: keep vreg pressure low
    _, _, acc = lax.fori_loop(0, T, step, (zeros, zeros, zeros), unroll=unroll)

    # ---- Stage 3: mean-over-time + Linear, collapsed to one f32 matmul ----
    out_ref[...] = (jnp.dot(acc, wlin_ref[...], preferred_element_type=jnp.float32)
                    + blin_ref[...]).astype(out_ref.dtype)


def _reorder_ifog(w, H):
    """Reorder gate blocks along the last axis from torch [i|f|g|o] to [i|f|o|g]."""
    return jnp.concatenate([w[..., :2 * H], w[..., 3 * H:4 * H], w[..., 2 * H:3 * H]],
                           axis=-1)


def _gate_major(w_f, w_b, H):
    """Interleave two (R, 4H) matrices per gate -> (R, 8H): [g0_f,g0_b | g1_f,g1_b | ...]."""
    r = w_f.shape[0]
    return jnp.concatenate([w_f.reshape(r, 4, H), w_b.reshape(r, 4, H)],
                           axis=-1).reshape(r, 8 * H)


def _vmem_limit_bytes():
    """Generation-aware scoped-VMEM budget (~75% of capacity; 48 MiB v7x-safe fallback)."""
    try:
        cap = getattr(pltpu.get_tpu_info(), "vmem_capacity_bytes", None)
        if cap:
            return int(cap) * 3 // 4
    except Exception:
        pass
    return 48 * 1024 * 1024


def context_posterior_forward(seq, params, *, batch_block=64, gin_dtype=jnp.bfloat16):
    """seq: (B, T, D) f32 (batch_first, like the PyTorch module). Returns (B, O) f32."""
    B, T, D = seq.shape
    H = params["w_hh_f"].shape[1]
    O = params["w_lin"].shape[0]
    H2, G = 2 * H, 8 * H
    O_pad = _round_up(max(O, 128), 128)

    bb = _round_up(min(batch_block, _round_up(B, 8)), 8)   # sublane-aligned batch block
    B_pad = _round_up(B, bb)
    if B_pad // bb == 1 and B_pad >= 16:
        # v7x megacore: keep >= 2 entries on the "parallel" grid axis when possible.
        bb = _round_up(B_pad // 2, 8)
        B_pad = _round_up(B, bb)
    n_blocks = B_pad // bb

    # ---- pack weights: gate order [i|f|o|g], fwd/bwd interleaved per gate ----
    wih_all = _gate_major(_reorder_ifog(params["w_ih_f"].T, H),
                          _reorder_ifog(params["w_ih_b"].T, H), H).astype(jnp.bfloat16)

    zeros_hh = jnp.zeros((H, 4 * H), jnp.float32)
    whh_top = _gate_major(_reorder_ifog(params["w_hh_f"].T, H), zeros_hh, H)
    whh_bot = _gate_major(zeros_hh, _reorder_ifog(params["w_hh_b"].T, H), H)
    whh_all = jnp.concatenate([whh_top, whh_bot], axis=0).astype(jnp.bfloat16)  # (2H, 8H)

    bias_all = _gate_major(
        _reorder_ifog((params["b_ih_f"] + params["b_hh_f"])[None, :], H),
        _reorder_ifog((params["b_ih_b"] + params["b_hh_b"])[None, :], H),
        H).astype(jnp.float32)                                                  # (1, 8H)

    wlin = (params["w_lin"].T / T).astype(jnp.float32)      # (2H, O); 1/T folded in
    wlin = jnp.pad(wlin, ((0, 0), (0, O_pad - O)))
    blin = jnp.pad(params["b_lin"][None, :].astype(jnp.float32),
                   ((0, 0), (0, O_pad - O)))

    # ---- time-major, batch-padded, bf16 activations ----
    seq_tbd = jnp.transpose(seq, (1, 0, 2)).astype(jnp.bfloat16)          # (T, B, D)
    seq_tbd = jnp.pad(seq_tbd, ((0, 0), (0, B_pad - B), (0, 0)))

    out = pl.pallas_call(
        _context_posterior_kernel,
        out_shape=jax.ShapeDtypeStruct((B_pad, O_pad), jnp.float32),
        grid_spec=pltpu.PrefetchScalarGridSpec(
            num_scalar_prefetch=0,
            grid=(n_blocks,),
            in_specs=[
                pl.BlockSpec((T, bb, D), lambda b: (0, b, 0)),    # batch-tiled sequence
                pl.BlockSpec((D, G), lambda b: (0, 0)),
                pl.BlockSpec((H2, G), lambda b: (0, 0)),
                pl.BlockSpec((1, G), lambda b: (0, 0)),
                pl.BlockSpec((H2, O_pad), lambda b: (0, 0)),
                pl.BlockSpec((1, O_pad), lambda b: (0, 0)),
            ],
            out_specs=pl.BlockSpec((bb, O_pad), lambda b: (b, 0)),   # lane-dense slab
            scratch_shapes=[pltpu.VMEM((T, bb, G), gin_dtype)],
        ),
        compiler_params=pltpu.CompilerParams(
            dimension_semantics=("parallel",),           # megacore splits batch blocks
            vmem_limit_bytes=_vmem_limit_bytes(),
        ),
    )(seq_tbd, wih_all, whh_all, bias_all, wlin, blin)

    return out[:B, :O]


def make_params(key, input_dim, hidden_dim, output_dim):
    """Deterministic synthetic weights in PyTorch layout (uniform(-1/sqrt(H), 1/sqrt(H)))."""
    ks = jax.random.split(key, 9)
    bound = 1.0 / float(hidden_dim) ** 0.5
    u = lambda k, shape: jax.random.uniform(k, shape, jnp.float32, -bound, bound)
    H4 = 4 * hidden_dim
    return dict(
        w_ih_f=u(ks[0], (H4, input_dim)), w_hh_f=u(ks[1], (H4, hidden_dim)),
        b_ih_f=u(ks[2], (H4,)),           b_hh_f=u(ks[3], (H4,)),
        w_ih_b=u(ks[4], (H4, input_dim)), w_hh_b=u(ks[5], (H4, hidden_dim)),
        b_ih_b=u(ks[6], (H4,)),           b_hh_b=u(ks[7], (H4,)),
        w_lin=u(ks[8], (output_dim, 2 * hidden_dim)),
        b_lin=jnp.zeros((output_dim,), jnp.float32),   # module zero-inits the Linear bias
    )


def reference_forward(seq, params):
    """Pure-JAX reference (lax.scan) with the same bf16-matmul / f32-accumulate discipline."""
    B, T, D = seq.shape
    H = params["w_hh_f"].shape[1]

    def run(w_ih, w_hh, b_ih, b_hh, xs):
        wih = w_ih.T.astype(jnp.bfloat16)
        whh = w_hh.T.astype(jnp.bfloat16)
        b = (b_ih + b_hh)[None, :]

        def step(carry, x):
            h, c = carry
            gates = (jnp.dot(x.astype(jnp.bfloat16), wih, preferred_element_type=jnp.float32)
                     + jnp.dot(h.astype(jnp.bfloat16), whh, preferred_element_type=jnp.float32)
                     + b)
            i = jax.nn.sigmoid(gates[:, 0:H])
            f = jax.nn.sigmoid(gates[:, H:2 * H])
            g = jnp.tanh(gates[:, 2 * H:3 * H])
            o = jax.nn.sigmoid(gates[:, 3 * H:4 * H])
            c = f * c + i * g
            h = o * jnp.tanh(c)
            return (h, c), h

        z = jnp.zeros((B, H), jnp.float32)
        _, hs = lax.scan(step, (z, z), xs)
        return hs                                         # (T, B, H)

    xs = jnp.transpose(seq, (1, 0, 2))
    hs_f = run(params["w_ih_f"], params["w_hh_f"], params["b_ih_f"], params["b_hh_f"], xs)
    hs_b = run(params["w_ih_b"], params["w_hh_b"], params["b_ih_b"], params["b_hh_b"],
               xs[::-1])[::-1]
    h_cat = jnp.concatenate([hs_f, hs_b], axis=-1)        # (T, B, 2H), fwd first (PyTorch)
    logit_seq = jnp.einsum('tbh,oh->tbo', h_cat, params["w_lin"]) + params["b_lin"]
    return jnp.mean(logit_seq, axis=0)                    # (B, O)


if __name__ == "__main__":
    B, T = 2, 8
    input_dim, hidden_dim, output_dim = 16, 32, 8
    context_limit = 1.0  # unused in forward()

    key = jax.random.PRNGKey(0)
    k_seq, k_par = jax.random.split(key)
    seq = jax.random.normal(k_seq, (B, T, input_dim), jnp.float32)
    params = make_params(k_par, input_dim, hidden_dim, output_dim)

    out = context_posterior_forward(seq, params)
    out = jax.block_until_ready(out)

    ref = reference_forward(seq, params)
    assert out.shape == (B, output_dim)
    # gin is stored in bf16 inside the kernel (per perf review); tolerance reflects that
    # extra rounding source. gin_dtype=jnp.float32 recovers the tighter match.
    assert jnp.allclose(out, ref, atol=1e-2, rtol=1e-2), (out, ref)
    print("KERNEL_OK")
</pallas_src>

<mosaic_0001>
module attributes {stable_mosaic.version = 11 : i64} {
  func.func @_context_posterior_kernel(%arg0: i32, %arg1: memref<8x8x16xbf16, #tpu.memory_space<vmem>>, %arg2: memref<16x256xbf16, #tpu.memory_space<vmem>>, %arg3: memref<64x256xbf16, #tpu.memory_space<vmem>>, %arg4: memref<1x256xf32, #tpu.memory_space<vmem>>, %arg5: memref<64x128xf32, #tpu.memory_space<vmem>>, %arg6: memref<1x128xf32, #tpu.memory_space<vmem>>, %arg7: memref<8x128xf32, #tpu.memory_space<vmem>>, %arg8: memref<8x8x256xbf16, #tpu.memory_space<vmem>>) attributes {dimension_semantics = [#tpu.dimension_semantics<parallel>], iteration_bounds = array<i64: 1>, scalar_prefetch = 0 : i64, scratch_operands = 1 : i64, tpu.core_type = #tpu.core_type<tc>, window_params = [{transform_indices = @transform_0, window_bounds = array<i64: 8, 8, 16>}, {pipeline_mode = #tpu.pipeline_mode<synchronous>, transform_indices = @transform_1, window_bounds = array<i64: 16, 256>}, {pipeline_mode = #tpu.pipeline_mode<synchronous>, transform_indices = @transform_2, window_bounds = array<i64: 64, 256>}, {pipeline_mode = #tpu.pipeline_mode<synchronous>, transform_indices = @transform_3, window_bounds = array<i64: 1, 256>}, {pipeline_mode = #tpu.pipeline_mode<synchronous>, transform_indices = @transform_4, window_bounds = array<i64: 64, 128>}, {pipeline_mode = #tpu.pipeline_mode<synchronous>, transform_indices = @transform_5, window_bounds = array<i64: 1, 128>}, {transform_indices = @transform_6, window_bounds = array<i64: 8, 128>}]} {
    %c0 = arith.constant 0 : index
    %c0_0 = arith.constant 0 : index
    %0 = vector.load %arg2[%c0, %c0_0] : memref<16x256xbf16, #tpu.memory_space<vmem>>, vector<16x256xbf16>
    %c0_1 = arith.constant 0 : index
    %c0_2 = arith.constant 0 : index
    %1 = vector.load %arg4[%c0_1, %c0_2] : memref<1x256xf32, #tpu.memory_space<vmem>>, vector<1x256xf32>
    %2 = tpu.iota {dimensions = array<i32: 1>} : vector<8x256xi32>
    %c64_i32 = arith.constant 64 : i32
    %c0_i32 = arith.constant 0 : i32
    %3 = arith.cmpi eq, %c64_i32, %c0_i32 : i32
    %c1_i32 = arith.constant 1 : i32
    %4 = arith.select %3, %c1_i32, %c64_i32 : i32
    %5 = vector.broadcast %4 : i32 to vector<8x256xi32>
    %6 = arith.remsi %2, %5 : vector<8x256xi32>
    %c0_i32_3 = arith.constant 0 : i32
    %7 = vector.broadcast %c0_i32_3 : i32 to vector<8x256xi32>
    %8 = arith.cmpi ne, %6, %7 : vector<8x256xi32>
    %c0_i32_4 = arith.constant 0 : i32
    %9 = vector.broadcast %c0_i32_4 : i32 to vector<8x256xi32>
    %10 = arith.cmpi slt, %6, %9 : vector<8x256xi32>
    %c0_i32_5 = arith.constant 0 : i32
    %11 = arith.cmpi slt, %4, %c0_i32_5 : i32
    %12 = vector.broadcast %11 : i1 to vector<8x256xi1>
    %13 = vector.broadcast %12 : vector<8x256xi1> to vector<8x256xi1>
    %14 = arith.xori %10, %13 : vector<8x256xi1>
    %15 = arith.andi %14, %8 : vector<8x256xi1>
    %16 = vector.broadcast %4 : i32 to vector<8x256xi32>
    %17 = arith.addi %6, %16 : vector<8x256xi32>
    %18 = arith.select %15, %17, %6 : vector<8x256xi1>, vector<8x256xi32>
    %c32_i32 = arith.constant 32 : i32
    %19 = vector.broadcast %c32_i32 : i32 to vector<8x256xi32>
    %20 = arith.cmpi sge, %18, %19 : vector<8x256xi32>
    %c0_6 = arith.constant 0 : index
    %c0_7 = arith.constant 0 : index
    %c0_8 = arith.constant 0 : index
    %21 = vector.load %arg1[%c0_6, %c0_7, %c0_8] : memref<8x8x16xbf16, #tpu.memory_space<vmem>>, vector<8x8x16xbf16>
    %22 = vector.shape_cast %21 : vector<8x8x16xbf16> to vector<64x16xbf16>
    %cst = arith.constant dense<0.000000e+00> : vector<64x256xf32>
    %23 = tpu.matmul %22, %0, %cst {dimension_numbers = #tpu.dot_dimension_numbers<[1], [0], [0], [1], [0, 0, 1, 1], [], []>} : vector<64x16xbf16>, vector<16x256xbf16>, vector<64x256xf32> -> vector<64x256xf32>
    %24 = vector.broadcast %1 : vector<1x256xf32> to vector<64x256xf32>
    %25 = arith.addf %23, %24 : vector<64x256xf32>
    %26 = vector.shape_cast %25 : vector<64x256xf32> to vector<8x8x256xf32>
    %27 = vector.extract_strided_slice %26 {offsets = [7, 0, 0], sizes = [1, 8, 256], strides = [1, 1, 1]} : vector<8x8x256xf32> to vector<1x8x256xf32>
    %28 = vector.shape_cast %27 : vector<1x8x256xf32> to vector<8x256xf32>
    %29 = vector.extract_strided_slice %26 {offsets = [0, 0, 0], sizes = [1, 8, 256], strides = [1, 1, 1]} : vector<8x8x256xf32> to vector<1x8x256xf32>
    %30 = vector.shape_cast %29 : vector<1x8x256xf32> to vector<8x256xf32>
    %31 = arith.select %20, %28, %30 : vector<8x256xi1>, vector<8x256xf32>
    %32 = arith.truncf %31 : vector<8x256xf32> to vector<8x256xbf16>
    %c0_9 = arith.constant 0 : index
    %c0_10 = arith.constant 0 : index
    %c0_11 = arith.constant 0 : index
    %33 = vector.load %arg8[%c0_9, %c0_10, %c0_11] : memref<8x8x256xbf16, #tpu.memory_space<vmem>>, vector<1x8x256xbf16>
    %34 = vector.shape_cast %33 : vector<1x8x256xbf16> to vector<8x256xbf16>
    %35 = vector.shape_cast %32 : vector<8x256xbf16> to vector<1x8x256xbf16>
    tpu.vector_store %arg8[%c0_9, %c0_10, %c0_11], %35 {strides = array<i32>} : memref<8x8x256xbf16, #tpu.memory_space<vmem>>, vector<1x8x256xbf16>,
    %36 = vector.extract_strided_slice %26 {offsets = [6, 0, 0], sizes = [1, 8, 256], strides = [1, 1, 1]} : vector<8x8x256xf32> to vector<1x8x256xf32>
    %37 = vector.shape_cast %36 : vector<1x8x256xf32> to vector<8x256xf32>
    %38 = vector.extract_strided_slice %26 {offsets = [1, 0, 0], sizes = [1, 8, 256], strides = [1, 1, 1]} : vector<8x8x256xf32> to vector<1x8x256xf32>
    %39 = vector.shape_cast %38 : vector<1x8x256xf32> to vector<8x256xf32>
    %40 = arith.select %20, %37, %39 : vector<8x256xi1>, vector<8x256xf32>
    %41 = arith.truncf %40 : vector<8x256xf32> to vector<8x256xbf16>
    %c1 = arith.constant 1 : index
    %c0_12 = arith.constant 0 : index
    %c0_13 = arith.constant 0 : index
    %42 = vector.load %arg8[%c1, %c0_12, %c0_13] : memref<8x8x256xbf16, #tpu.memory_space<vmem>>, vector<1x8x256xbf16>
    %43 = vector.shape_cast %42 : vector<1x8x256xbf16> to vector<8x256xbf16>
    %44 = vector.shape_cast %41 : vector<8x256xbf16> to vector<1x8x256xbf16>
    tpu.vector_store %arg8[%c1, %c0_12, %c0_13], %44 {strides = array<i32>} : memref<8x8x256xbf16, #tpu.memory_space<vmem>>, vector<1x8x256xbf16>,
    %45 = vector.extract_strided_slice %26 {offsets = [5, 0, 0], sizes = [1, 8, 256], strides = [1, 1, 1]} : vector<8x8x256xf32> to vector<1x8x256xf32>
    %46 = vector.shape_cast %45 : vector<1x8x256xf32> to vector<8x256xf32>
    %47 = vector.extract_strided_slice %26 {offsets = [2, 0, 0], sizes = [1, 8, 256], strides = [1, 1, 1]} : vector<8x8x256xf32> to vector<1x8x256xf32>
    %48 = vector.shape_cast %47 : vector<1x8x256xf32> to vector<8x256xf32>
    %49 = arith.select %20, %46, %48 : vector<8x256xi1>, vector<8x256xf32>
    %50 = arith.truncf %49 : vector<8x256xf32> to vector<8x256xbf16>
    %c2 = arith.constant 2 : index
    %c0_14 = arith.constant 0 : index
    %c0_15 = arith.constant 0 : index
    %51 = vector.load %arg8[%c2, %c0_14, %c0_15] : memref<8x8x256xbf16, #tpu.memory_space<vmem>>, vector<1x8x256xbf16>
    %52 = vector.shape_cast %51 : vector<1x8x256xbf16> to vector<8x256xbf16>
    %53 = vector.shape_cast %50 : vector<8x256xbf16> to vector<1x8x256xbf16>
    tpu.vector_store %arg8[%c2, %c0_14, %c0_15], %53 {strides = array<i32>} : memref<8x8x256xbf16, #tpu.memory_space<vmem>>, vector<1x8x256xbf16>,
    %54 = vector.extract_strided_slice %26 {offsets = [4, 0, 0], sizes = [1, 8, 256], strides = [1, 1, 1]} : vector<8x8x256xf32> to vector<1x8x256xf32>
    %55 = vector.shape_cast %54 : vector<1x8x256xf32> to vector<8x256xf32>
    %56 = vector.extract_strided_slice %26 {offsets = [3, 0, 0], sizes = [1, 8, 256], strides = [1, 1, 1]} : vector<8x8x256xf32> to vector<1x8x256xf32>
    %57 = vector.shape_cast %56 : vector<1x8x256xf32> to vector<8x256xf32>
    %58 = arith.select %20, %55, %57 : vector<8x256xi1>, vector<8x256xf32>
    %59 = arith.truncf %58 : vector<8x256xf32> to vector<8x256xbf16>
    %c3 = arith.constant 3 : index
    %c0_16 = arith.constant 0 : index
    %c0_17 = arith.constant 0 : index
    %60 = vector.load %arg8[%c3, %c0_16, %c0_17] : memref<8x8x256xbf16, #tpu.memory_space<vmem>>, vector<1x8x256xbf16>
    %61 = vector.shape_cast %60 : vector<1x8x256xbf16> to vector<8x256xbf16>
    %62 = vector.shape_cast %59 : vector<8x256xbf16> to vector<1x8x256xbf16>
    tpu.vector_store %arg8[%c3, %c0_16, %c0_17], %62 {strides = array<i32>} : memref<8x8x256xbf16, #tpu.memory_space<vmem>>, vector<1x8x256xbf16>,
    %63 = vector.extract_strided_slice %26 {offsets = [3, 0, 0], sizes = [1, 8, 256], strides = [1, 1, 1]} : vector<8x8x256xf32> to vector<1x8x256xf32>
    %64 = vector.shape_cast %63 : vector<1x8x256xf32> to vector<8x256xf32>
    %65 = vector.extract_strided_slice %26 {offsets = [4, 0, 0], sizes = [1, 8, 256], strides = [1, 1, 1]} : vector<8x8x256xf32> to vector<1x8x256xf32>
    %66 = vector.shape_cast %65 : vector<1x8x256xf32> to vector<8x256xf32>
    %67 = arith.select %20, %64, %66 : vector<8x256xi1>, vector<8x256xf32>
    %68 = arith.truncf %67 : vector<8x256xf32> to vector<8x256xbf16>
    %c4 = arith.constant 4 : index
    %c0_18 = arith.constant 0 : index
    %c0_19 = arith.constant 0 : index
    %69 = vector.load %arg8[%c4, %c0_18, %c0_19] : memref<8x8x256xbf16, #tpu.memory_space<vmem>>, vector<1x8x256xbf16>
    %70 = vector.shape_cast %69 : vector<1x8x256xbf16> to vector<8x256xbf16>
    %71 = vector.shape_cast %68 : vector<8x256xbf16> to vector<1x8x256xbf16>
    tpu.vector_store %arg8[%c4, %c0_18, %c0_19], %71 {strides = array<i32>} : memref<8x8x256xbf16, #tpu.memory_space<vmem>>, vector<1x8x256xbf16>,
    %72 = vector.extract_strided_slice %26 {offsets = [2, 0, 0], sizes = [1, 8, 256], strides = [1, 1, 1]} : vector<8x8x256xf32> to vector<1x8x256xf32>
    %73 = vector.shape_cast %72 : vector<1x8x256xf32> to vector<8x256xf32>
    %74 = vector.extract_strided_slice %26 {offsets = [5, 0, 0], sizes = [1, 8, 256], strides = [1, 1, 1]} : vector<8x8x256xf32> to vector<1x8x256xf32>
    %75 = vector.shape_cast %74 : vector<1x8x256xf32> to vector<8x256xf32>
    %76 = arith.select %20, %73, %75 : vector<8x256xi1>, vector<8x256xf32>
    %77 = arith.truncf %76 : vector<8x256xf32> to vector<8x256xbf16>
    %c5 = arith.constant 5 : index
    %c0_20 = arith.constant 0 : index
    %c0_21 = arith.constant 0 : index
    %78 = vector.load %arg8[%c5, %c0_20, %c0_21] : memref<8x8x256xbf16, #tpu.memory_space<vmem>>, vector<1x8x256xbf16>
    %79 = vector.shape_cast %78 : vector<1x8x256xbf16> to vector<8x256xbf16>
    %80 = vector.shape_cast %77 : vector<8x256xbf16> to vector<1x8x256xbf16>
    tpu.vector_store %arg8[%c5, %c0_20, %c0_21], %80 {strides = array<i32>} : memref<8x8x256xbf16, #tpu.memory_space<vmem>>, vector<1x8x256xbf16>,
    %81 = vector.extract_strided_slice %26 {offsets = [1, 0, 0], sizes = [1, 8, 256], strides = [1, 1, 1]} : vector<8x8x256xf32> to vector<1x8x256xf32>
    %82 = vector.shape_cast %81 : vector<1x8x256xf32> to vector<8x256xf32>
    %83 = vector.extract_strided_slice %26 {offsets = [6, 0, 0], sizes = [1, 8, 256], strides = [1, 1, 1]} : vector<8x8x256xf32> to vector<1x8x256xf32>
    %84 = vector.shape_cast %83 : vector<1x8x256xf32> to vector<8x256xf32>
    %85 = arith.select %20, %82, %84 : vector<8x256xi1>, vector<8x256xf32>
    %86 = arith.truncf %85 : vector<8x256xf32> to vector<8x256xbf16>
    %c6 = arith.constant 6 : index
    %c0_22 = arith.constant 0 : index
    %c0_23 = arith.constant 0 : index
    %87 = vector.load %arg8[%c6, %c0_22, %c0_23] : memref<8x8x256xbf16, #tpu.memory_space<vmem>>, vector<1x8x256xbf16>
    %88 = vector.shape_cast %87 : vector<1x8x256xbf16> to vector<8x256xbf16>
    %89 = vector.shape_cast %86 : vector<8x256xbf16> to vector<1x8x256xbf16>
    tpu.vector_store %arg8[%c6, %c0_22, %c0_23], %89 {strides = array<i32>} : memref<8x8x256xbf16, #tpu.memory_space<vmem>>, vector<1x8x256xbf16>,
    %90 = vector.extract_strided_slice %26 {offsets = [0, 0, 0], sizes = [1, 8, 256], strides = [1, 1, 1]} : vector<8x8x256xf32> to vector<1x8x256xf32>
    %91 = vector.shape_cast %90 : vector<1x8x256xf32> to vector<8x256xf32>
    %92 = vector.extract_strided_slice %26 {offsets = [7, 0, 0], sizes = [1, 8, 256], strides = [1, 1, 1]} : vector<8x8x256xf32> to vector<1x8x256xf32>
    %93 = vector.shape_cast %92 : vector<1x8x256xf32> to vector<8x256xf32>
    %94 = arith.select %20, %91, %93 : vector<8x256xi1>, vector<8x256xf32>
    %95 = arith.truncf %94 : vector<8x256xf32> to vector<8x256xbf16>
    %c7 = arith.constant 7 : index
    %c0_24 = arith.constant 0 : index
    %c0_25 = arith.constant 0 : index
    %96 = vector.load %arg8[%c7, %c0_24, %c0_25] : memref<8x8x256xbf16, #tpu.memory_space<vmem>>, vector<1x8x256xbf16>
    %97 = vector.shape_cast %96 : vector<1x8x256xbf16> to vector<8x256xbf16>
    %98 = vector.shape_cast %95 : vector<8x256xbf16> to vector<1x8x256xbf16>
    tpu.vector_store %arg8[%c7, %c0_24, %c0_25], %98 {strides = array<i32>} : memref<8x8x256xbf16, #tpu.memory_space<vmem>>, vector<1x8x256xbf16>,
    %c0_26 = arith.constant 0 : index
    %c0_27 = arith.constant 0 : index
    %99 = vector.load %arg3[%c0_26, %c0_27] : memref<64x256xbf16, #tpu.memory_space<vmem>>, vector<64x256xbf16>
    %cst_28 = arith.constant 0.000000e+00 : f32
    %100 = vector.broadcast %cst_28 : f32 to vector<8x64xf32>
    %c0_i32_29 = arith.constant 0 : i32
    %101 = arith.index_cast %c0_i32_29 : i32 to index
    %c0_30 = arith.constant 0 : index
    %c0_31 = arith.constant 0 : index
    %102 = vector.load %arg8[%101, %c0_30, %c0_31] : memref<8x8x256xbf16, #tpu.memory_space<vmem>>, vector<1x8x256xbf16>
    %103 = vector.shape_cast %102 : vector<1x8x256xbf16> to vector<8x256xbf16>
    %104 = arith.extf %103 : vector<8x256xbf16> to vector<8x256xf32>
    %105 = arith.truncf %100 : vector<8x64xf32> to vector<8x64xbf16>
    %cst_32 = arith.constant dense<0.000000e+00> : vector<8x256xf32>
    %106 = tpu.matmul %105, %99, %cst_32 {dimension_numbers = #tpu.dot_dimension_numbers<[1], [0], [0], [1], [0, 0, 1, 1], [], []>} : vector<8x64xbf16>, vector<64x256xbf16>, vector<8x256xf32> -> vector<8x256xf32>
    %107 = arith.addf %104, %106 : vector<8x256xf32>
    %108 = vector.extract_strided_slice %107 {offsets = [0, 0], sizes = [8, 192], strides = [1, 1]} : vector<8x256xf32> to vector<8x192xf32>
    %109 = arith.negf %108 : vector<8x192xf32>
    %110 = math.exp %109 : vector<8x192xf32>
    %cst_33 = arith.constant 1.000000e+00 : f32
    %111 = vector.broadcast %cst_33 : f32 to vector<8x192xf32>
    %112 = arith.addf %111, %110 : vector<8x192xf32>
    %113 = arith.divf %111, %112 : vector<8x192xf32>
    %114 = vector.extract_strided_slice %107 {offsets = [0, 192], sizes = [8, 64], strides = [1, 1]} : vector<8x256xf32> to vector<8x64xf32>
    %115 = math.tanh %114 : vector<8x64xf32>
    %116 = vector.extract_strided_slice %113 {offsets = [0, 0], sizes = [8, 64], strides = [1, 1]} : vector<8x192xf32> to vector<8x64xf32>
    %117 = vector.extract_strided_slice %113 {offsets = [0, 64], sizes = [8, 64], strides = [1, 1]} : vector<8x192xf32> to vector<8x64xf32>
    %118 = vector.extract_strided_slice %113 {offsets = [0, 128], sizes = [8, 64], strides = [1, 1]} : vector<8x192xf32> to vector<8x64xf32>
    %119 = arith.mulf %117, %100 : vector<8x64xf32>
    %120 = arith.mulf %116, %115 : vector<8x64xf32>
    %121 = arith.addf %119, %120 : vector<8x64xf32>
    %122 = math.tanh %121 : vector<8x64xf32>
    %123 = arith.mulf %118, %122 : vector<8x64xf32>
    %124 = arith.addf %100, %123 : vector<8x64xf32>
    %c1_i32_34 = arith.constant 1 : i32
    %125 = arith.index_cast %c1_i32_34 : i32 to index
    %c0_35 = arith.constant 0 : index
    %c0_36 = arith.constant 0 : index
    %126 = vector.load %arg8[%125, %c0_35, %c0_36] : memref<8x8x256xbf16, #tpu.memory_space<vmem>>, vector<1x8x256xbf16>
    %127 = vector.shape_cast %126 : vector<1x8x256xbf16> to vector<8x256xbf16>
    %128 = arith.extf %127 : vector<8x256xbf16> to vector<8x256xf32>
    %129 = arith.truncf %123 : vector<8x64xf32> to vector<8x64xbf16>
    %cst_37 = arith.constant dense<0.000000e+00> : vector<8x256xf32>
    %130 = tpu.matmul %129, %99, %cst_37 {dimension_numbers = #tpu.dot_dimension_numbers<[1], [0], [0], [1], [0, 0, 1, 1], [], []>} : vector<8x64xbf16>, vector<64x256xbf16>, vector<8x256xf32> -> vector<8x256xf32>
    %131 = arith.addf %128, %130 : vector<8x256xf32>
    %132 = vector.extract_strided_slice %131 {offsets = [0, 0], sizes = [8, 192], strides = [1, 1]} : vector<8x256xf32> to vector<8x192xf32>
    %133 = arith.negf %132 : vector<8x192xf32>
    %134 = math.exp %133 : vector<8x192xf32>
    %cst_38 = arith.constant 1.000000e+00 : f32
    %135 = vector.broadcast %cst_38 : f32 to vector<8x192xf32>
    %136 = arith.addf %135, %134 : vector<8x192xf32>
    %137 = arith.divf %135, %136 : vector<8x192xf32>
    %138 = vector.extract_strided_slice %131 {offsets = [0, 192], sizes = [8, 64], strides = [1, 1]} : vector<8x256xf32> to vector<8x64xf32>
    %139 = math.tanh %138 : vector<8x64xf32>
    %140 = vector.extract_strided_slice %137 {offsets = [0, 0], sizes = [8, 64], strides = [1, 1]} : vector<8x192xf32> to vector<8x64xf32>
    %141 = vector.extract_strided_slice %137 {offsets = [0, 64], sizes = [8, 64], strides = [1, 1]} : vector<8x192xf32> to vector<8x64xf32>
    %142 = vector.extract_strided_slice %137 {offsets = [0, 128], sizes = [8, 64], strides = [1, 1]} : vector<8x192xf32> to vector<8x64xf32>
    %143 = arith.mulf %141, %121 : vector<8x64xf32>
    %144 = arith.mulf %140, %139 : vector<8x64xf32>
    %145 = arith.addf %143, %144 : vector<8x64xf32>
    %146 = math.tanh %145 : vector<8x64xf32>
    %147 = arith.mulf %142, %146 : vector<8x64xf32>
    %148 = arith.addf %124, %147 : vector<8x64xf32>
    %c2_i32 = arith.constant 2 : i32
    %149 = arith.index_cast %c2_i32 : i32 to index
    %c0_39 = arith.constant 0 : index
    %c0_40 = arith.constant 0 : index
    %150 = vector.load %arg8[%149, %c0_39, %c0_40] : memref<8x8x256xbf16, #tpu.memory_space<vmem>>, vector<1x8x256xbf16>
    %151 = vector.shape_cast %150 : vector<1x8x256xbf16> to vector<8x256xbf16>
    %152 = arith.extf %151 : vector<8x256xbf16> to vector<8x256xf32>
    %153 = arith.truncf %147 : vector<8x64xf32> to vector<8x64xbf16>
    %cst_41 = arith.constant dense<0.000000e+00> : vector<8x256xf32>
    %154 = tpu.matmul %153, %99, %cst_41 {dimension_numbers = #tpu.dot_dimension_numbers<[1], [0], [0], [1], [0, 0, 1, 1], [], []>} : vector<8x64xbf16>, vector<64x256xbf16>, vector<8x256xf32> -> vector<8x256xf32>
    %155 = arith.addf %152, %154 : vector<8x256xf32>
    %156 = vector.extract_strided_slice %155 {offsets = [0, 0], sizes = [8, 192], strides = [1, 1]} : vector<8x256xf32> to vector<8x192xf32>
    %157 = arith.negf %156 : vector<8x192xf32>
    %158 = math.exp %157 : vector<8x192xf32>
    %cst_42 = arith.constant 1.000000e+00 : f32
    %159 = vector.broadcast %cst_42 : f32 to vector<8x192xf32>
    %160 = arith.addf %159, %158 : vector<8x192xf32>
    %161 = arith.divf %159, %160 : vector<8x192xf32>
    %162 = vector.extract_strided_slice %155 {offsets = [0, 192], sizes = [8, 64], strides = [1, 1]} : vector<8x256xf32> to vector<8x64xf32>
    %163 = math.tanh %162 : vector<8x64xf32>
    %164 = vector.extract_strided_slice %161 {offsets = [0, 0], sizes = [8, 64], strides = [1, 1]} : vector<8x192xf32> to vector<8x64xf32>
    %165 = vector.extract_strided_slice %161 {offsets = [0, 64], sizes = [8, 64], strides = [1, 1]} : vector<8x192xf32> to vector<8x64xf32>
    %166 = vector.extract_strided_slice %161 {offsets = [0, 128], sizes = [8, 64], strides = [1, 1]} : vector<8x192xf32> to vector<8x64xf32>
    %167 = arith.mulf %165, %145 : vector<8x64xf32>
    %168 = arith.mulf %164, %163 : vector<8x64xf32>
    %169 = arith.addf %167, %168 : vector<8x64xf32>
    %170 = math.tanh %169 : vector<8x64xf32>
    %171 = arith.mulf %166, %170 : vector<8x64xf32>
    %172 = arith.addf %148, %171 : vector<8x64xf32>
    %c3_i32 = arith.constant 3 : i32
    %173 = arith.index_cast %c3_i32 : i32 to index
    %c0_43 = arith.constant 0 : index
    %c0_44 = arith.constant 0 : index
    %174 = vector.load %arg8[%173, %c0_43, %c0_44] : memref<8x8x256xbf16, #tpu.memory_space<vmem>>, vector<1x8x256xbf16>
    %175 = vector.shape_cast %174 : vector<1x8x256xbf16> to vector<8x256xbf16>
    %176 = arith.extf %175 : vector<8x256xbf16> to vector<8x256xf32>
    %177 = arith.truncf %171 : vector<8x64xf32> to vector<8x64xbf16>
    %cst_45 = arith.constant dense<0.000000e+00> : vector<8x256xf32>
    %178 = tpu.matmul %177, %99, %cst_45 {dimension_numbers = #tpu.dot_dimension_numbers<[1], [0], [0], [1], [0, 0, 1, 1], [], []>} : vector<8x64xbf16>, vector<64x256xbf16>, vector<8x256xf32> -> vector<8x256xf32>
    %179 = arith.addf %176, %178 : vector<8x256xf32>
    %180 = vector.extract_strided_slice %179 {offsets = [0, 0], sizes = [8, 192], strides = [1, 1]} : vector<8x256xf32> to vector<8x192xf32>
    %181 = arith.negf %180 : vector<8x192xf32>
    %182 = math.exp %181 : vector<8x192xf32>
    %cst_46 = arith.constant 1.000000e+00 : f32
    %183 = vector.broadcast %cst_46 : f32 to vector<8x192xf32>
    %184 = arith.addf %183, %182 : vector<8x192xf32>
    %185 = arith.divf %183, %184 : vector<8x192xf32>
    %186 = vector.extract_strided_slice %179 {offsets = [0, 192], sizes = [8, 64], strides = [1, 1]} : vector<8x256xf32> to vector<8x64xf32>
    %187 = math.tanh %186 : vector<8x64xf32>
    %188 = vector.extract_strided_slice %185 {offsets = [0, 0], sizes = [8, 64], strides = [1, 1]} : vector<8x192xf32> to vector<8x64xf32>
    %189 = vector.extract_strided_slice %185 {offsets = [0, 64], sizes = [8, 64], strides = [1, 1]} : vector<8x192xf32> to vector<8x64xf32>
    %190 = vector.extract_strided_slice %185 {offsets = [0, 128], sizes = [8, 64], strides = [1, 1]} : vector<8x192xf32> to vector<8x64xf32>
    %191 = arith.mulf %189, %169 : vector<8x64xf32>
    %192 = arith.mulf %188, %187 : vector<8x64xf32>
    %193 = arith.addf %191, %192 : vector<8x64xf32>
    %194 = math.tanh %193 : vector<8x64xf32>
    %195 = arith.mulf %190, %194 : vector<8x64xf32>
    %196 = arith.addf %172, %195 : vector<8x64xf32>
    %c4_i32 = arith.constant 4 : i32
    %197 = arith.index_cast %c4_i32 : i32 to index
    %c0_47 = arith.constant 0 : index
    %c0_48 = arith.constant 0 : index
    %198 = vector.load %arg8[%197, %c0_47, %c0_48] : memref<8x8x256xbf16, #tpu.memory_space<vmem>>, vector<1x8x256xbf16>
    %199 = vector.shape_cast %198 : vector<1x8x256xbf16> to vector<8x256xbf16>
    %200 = arith.extf %199 : vector<8x256xbf16> to vector<8x256xf32>
    %201 = arith.truncf %195 : vector<8x64xf32> to vector<8x64xbf16>
    %cst_49 = arith.constant dense<0.000000e+00> : vector<8x256xf32>
    %202 = tpu.matmul %201, %99, %cst_49 {dimension_numbers = #tpu.dot_dimension_numbers<[1], [0], [0], [1], [0, 0, 1, 1], [], []>} : vector<8x64xbf16>, vector<64x256xbf16>, vector<8x256xf32> -> vector<8x256xf32>
    %203 = arith.addf %200, %202 : vector<8x256xf32>
    %204 = vector.extract_strided_slice %203 {offsets = [0, 0], sizes = [8, 192], strides = [1, 1]} : vector<8x256xf32> to vector<8x192xf32>
    %205 = arith.negf %204 : vector<8x192xf32>
    %206 = math.exp %205 : vector<8x192xf32>
    %cst_50 = arith.constant 1.000000e+00 : f32
    %207 = vector.broadcast %cst_50 : f32 to vector<8x192xf32>
    %208 = arith.addf %207, %206 : vector<8x192xf32>
    %209 = arith.divf %207, %208 : vector<8x192xf32>
    %210 = vector.extract_strided_slice %203 {offsets = [0, 192], sizes = [8, 64], strides = [1, 1]} : vector<8x256xf32> to vector<8x64xf32>
    %211 = math.tanh %210 : vector<8x64xf32>
    %212 = vector.extract_strided_slice %209 {offsets = [0, 0], sizes = [8, 64], strides = [1, 1]} : vector<8x192xf32> to vector<8x64xf32>
    %213 = vector.extract_strided_slice %209 {offsets = [0, 64], sizes = [8, 64], strides = [1, 1]} : vector<8x192xf32> to vector<8x64xf32>
    %214 = vector.extract_strided_slice %209 {offsets = [0, 128], sizes = [8, 64], strides = [1, 1]} : vector<8x192xf32> to vector<8x64xf32>
    %215 = arith.mulf %213, %193 : vector<8x64xf32>
    %216 = arith.mulf %212, %211 : vector<8x64xf32>
    %217 = arith.addf %215, %216 : vector<8x64xf32>
    %218 = math.tanh %217 : vector<8x64xf32>
    %219 = arith.mulf %214, %218 : vector<8x64xf32>
    %220 = arith.addf %196, %219 : vector<8x64xf32>
    %c5_i32 = arith.constant 5 : i32
    %221 = arith.index_cast %c5_i32 : i32 to index
    %c0_51 = arith.constant 0 : index
    %c0_52 = arith.constant 0 : index
    %222 = vector.load %arg8[%221, %c0_51, %c0_52] : memref<8x8x256xbf16, #tpu.memory_space<vmem>>, vector<1x8x256xbf16>
    %223 = vector.shape_cast %222 : vector<1x8x256xbf16> to vector<8x256xbf16>
    %224 = arith.extf %223 : vector<8x256xbf16> to vector<8x256xf32>
    %225 = arith.truncf %219 : vector<8x64xf32> to vector<8x64xbf16>
    %cst_53 = arith.constant dense<0.000000e+00> : vector<8x256xf32>
    %226 = tpu.matmul %225, %99, %cst_53 {dimension_numbers = #tpu.dot_dimension_numbers<[1], [0], [0], [1], [0, 0, 1, 1], [], []>} : vector<8x64xbf16>, vector<64x256xbf16>, vector<8x256xf32> -> vector<8x256xf32>
    %227 = arith.addf %224, %226 : vector<8x256xf32>
    %228 = vector.extract_strided_slice %227 {offsets = [0, 0], sizes = [8, 192], strides = [1, 1]} : vector<8x256xf32> to vector<8x192xf32>
    %229 = arith.negf %228 : vector<8x192xf32>
    %230 = math.exp %229 : vector<8x192xf32>
    %cst_54 = arith.constant 1.000000e+00 : f32
    %231 = vector.broadcast %cst_54 : f32 to vector<8x192xf32>
    %232 = arith.addf %231, %230 : vector<8x192xf32>
    %233 = arith.divf %231, %232 : vector<8x192xf32>
    %234 = vector.extract_strided_slice %227 {offsets = [0, 192], sizes = [8, 64], strides = [1, 1]} : vector<8x256xf32> to vector<8x64xf32>
    %235 = math.tanh %234 : vector<8x64xf32>
    %236 = vector.extract_strided_slice %233 {offsets = [0, 0], sizes = [8, 64], strides = [1, 1]} : vector<8x192xf32> to vector<8x64xf32>
    %237 = vector.extract_strided_slice %233 {offsets = [0, 64], sizes = [8, 64], strides = [1, 1]} : vector<8x192xf32> to vector<8x64xf32>
    %238 = vector.extract_strided_slice %233 {offsets = [0, 128], sizes = [8, 64], strides = [1, 1]} : vector<8x192xf32> to vector<8x64xf32>
    %239 = arith.mulf %237, %217 : vector<8x64xf32>
    %240 = arith.mulf %236, %235 : vector<8x64xf32>
    %241 = arith.addf %239, %240 : vector<8x64xf32>
    %242 = math.tanh %241 : vector<8x64xf32>
    %243 = arith.mulf %238, %242 : vector<8x64xf32>
    %244 = arith.addf %220, %243 : vector<8x64xf32>
    %c6_i32 = arith.constant 6 : i32
    %245 = arith.index_cast %c6_i32 : i32 to index
    %c0_55 = arith.constant 0 : index
    %c0_56 = arith.constant 0 : index
    %246 = vector.load %arg8[%245, %c0_55, %c0_56] : memref<8x8x256xbf16, #tpu.memory_space<vmem>>, vector<1x8x256xbf16>
    %247 = vector.shape_cast %246 : vector<1x8x256xbf16> to vector<8x256xbf16>
    %248 = arith.extf %247 : vector<8x256xbf16> to vector<8x256xf32>
    %249 = arith.truncf %243 : vector<8x64xf32> to vector<8x64xbf16>
    %cst_57 = arith.constant dense<0.000000e+00> : vector<8x256xf32>
    %250 = tpu.matmul %249, %99, %cst_57 {dimension_numbers = #tpu.dot_dimension_numbers<[1], [0], [0], [1], [0, 0, 1, 1], [], []>} : vector<8x64xbf16>, vector<64x256xbf16>, vector<8x256xf32> -> vector<8x256xf32>
    %251 = arith.addf %248, %250 : vector<8x256xf32>
    %252 = vector.extract_strided_slice %251 {offsets = [0, 0], sizes = [8, 192], strides = [1, 1]} : vector<8x256xf32> to vector<8x192xf32>
    %253 = arith.negf %252 : vector<8x192xf32>
    %254 = math.exp %253 : vector<8x192xf32>
    %cst_58 = arith.constant 1.000000e+00 : f32
    %255 = vector.broadcast %cst_58 : f32 to vector<8x192xf32>
    %256 = arith.addf %255, %254 : vector<8x192xf32>
    %257 = arith.divf %255, %256 : vector<8x192xf32>
    %258 = vector.extract_strided_slice %251 {offsets = [0, 192], sizes = [8, 64], strides = [1, 1]} : vector<8x256xf32> to vector<8x64xf32>
    %259 = math.tanh %258 : vector<8x64xf32>
    %260 = vector.extract_strided_slice %257 {offsets = [0, 0], sizes = [8, 64], strides = [1, 1]} : vector<8x192xf32> to vector<8x64xf32>
    %261 = vector.extract_strided_slice %257 {offsets = [0, 64], sizes = [8, 64], strides = [1, 1]} : vector<8x192xf32> to vector<8x64xf32>
    %262 = vector.extract_strided_slice %257 {offsets = [0, 128], sizes = [8, 64], strides = [1, 1]} : vector<8x192xf32> to vector<8x64xf32>
    %263 = arith.mulf %261, %241 : vector<8x64xf32>
    %264 = arith.mulf %260, %259 : vector<8x64xf32>
    %265 = arith.addf %263, %264 : vector<8x64xf32>
    %266 = math.tanh %265 : vector<8x64xf32>
    %267 = arith.mulf %262, %266 : vector<8x64xf32>
    %268 = arith.addf %244, %267 : vector<8x64xf32>
    %c7_i32 = arith.constant 7 : i32
    %269 = arith.index_cast %c7_i32 : i32 to index
    %c0_59 = arith.constant 0 : index
    %c0_60 = arith.constant 0 : index
    %270 = vector.load %arg8[%269, %c0_59, %c0_60] : memref<8x8x256xbf16, #tpu.memory_space<vmem>>, vector<1x8x256xbf16>
    %271 = vector.shape_cast %270 : vector<1x8x256xbf16> to vector<8x256xbf16>
    %272 = arith.extf %271 : vector<8x256xbf16> to vector<8x256xf32>
    %273 = arith.truncf %267 : vector<8x64xf32> to vector<8x64xbf16>
    %cst_61 = arith.constant dense<0.000000e+00> : vector<8x256xf32>
    %274 = tpu.matmul %273, %99, %cst_61 {dimension_numbers = #tpu.dot_dimension_numbers<[1], [0], [0], [1], [0, 0, 1, 1], [], []>} : vector<8x64xbf16>, vector<64x256xbf16>, vector<8x256xf32> -> vector<8x256xf32>
    %275 = arith.addf %272, %274 : vector<8x256xf32>
    %276 = vector.extract_strided_slice %275 {offsets = [0, 0], sizes = [8, 192], strides = [1, 1]} : vector<8x256xf32> to vector<8x192xf32>
    %277 = arith.negf %276 : vector<8x192xf32>
    %278 = math.exp %277 : vector<8x192xf32>
    %cst_62 = arith.constant 1.000000e+00 : f32
    %279 = vector.broadcast %cst_62 : f32 to vector<8x192xf32>
    %280 = arith.addf %279, %278 : vector<8x192xf32>
    %281 = arith.divf %279, %280 : vector<8x192xf32>
    %282 = vector.extract_strided_slice %275 {offsets = [0, 192], sizes = [8, 64], strides = [1, 1]} : vector<8x256xf32> to vector<8x64xf32>
    %283 = math.tanh %282 : vector<8x64xf32>
    %284 = vector.extract_strided_slice %281 {offsets = [0, 0], sizes = [8, 64], strides = [1, 1]} : vector<8x192xf32> to vector<8x64xf32>
    %285 = vector.extract_strided_slice %281 {offsets = [0, 64], sizes = [8, 64], strides = [1, 1]} : vector<8x192xf32> to vector<8x64xf32>
    %286 = vector.extract_strided_slice %281 {offsets = [0, 128], sizes = [8, 64], strides = [1, 1]} : vector<8x192xf32> to vector<8x64xf32>
    %287 = arith.mulf %285, %265 : vector<8x64xf32>
    %288 = arith.mulf %284, %283 : vector<8x64xf32>
    %289 = arith.addf %287, %288 : vector<8x64xf32>
    %290 = math.tanh %289 : vector<8x64xf32>
    %291 = arith.mulf %286, %290 : vector<8x64xf32>
    %292 = arith.addf %268, %291 : vector<8x64xf32>
    %c8_i32 = arith.constant 8 : i32
    %c0_63 = arith.constant 0 : index
    %c0_64 = arith.constant 0 : index
    %293 = vector.load %arg5[%c0_63, %c0_64] : memref<64x128xf32, #tpu.memory_space<vmem>>, vector<64x128xf32>
    %cst_65 = arith.constant dense<0.000000e+00> : vector<8x128xf32>
    %294 = tpu.matmul %292, %293, %cst_65 {dimension_numbers = #tpu.dot_dimension_numbers<[1], [0], [0], [1], [0, 0, 1, 1], [], []>} : vector<8x64xf32>, vector<64x128xf32>, vector<8x128xf32> -> vector<8x128xf32>
    %c0_66 = arith.constant 0 : index
    %c0_67 = arith.constant 0 : index
    %295 = vector.load %arg6[%c0_66, %c0_67] : memref<1x128xf32, #tpu.memory_space<vmem>>, vector<1x128xf32>
    %296 = vector.broadcast %295 : vector<1x128xf32> to vector<8x128xf32>
    %297 = arith.addf %294, %296 : vector<8x128xf32>
    %c0_68 = arith.constant 0 : index
    %c0_69 = arith.constant 0 : index
    %298 = vector.load %arg7[%c0_68, %c0_69] : memref<8x128xf32, #tpu.memory_space<vmem>>, vector<8x128xf32>
    tpu.vector_store %arg7[%c0_68, %c0_69], %297 {strides = array<i32>} : memref<8x128xf32, #tpu.memory_space<vmem>>, vector<8x128xf32>,
    return
  }
  func.func @transform_0(%arg0: i32) -> (i32, i32, i32) {
    %c0_i32 = arith.constant 0 : i32
    %c0_i32_0 = arith.constant 0 : i32
    %c0_i32_1 = arith.constant 0 : i32
    return %c0_i32, %arg0, %c0_i32_0 : i32, i32, i32
  }
  func.func @transform_1(%arg0: i32) -> (i32, i32) {
    %c0_i32 = arith.constant 0 : i32
    %c0_i32_0 = arith.constant 0 : i32
    %c0_i32_1 = arith.constant 0 : i32
    return %c0_i32, %c0_i32_0 : i32, i32
  }
  func.func @transform_2(%arg0: i32) -> (i32, i32) {
    %c0_i32 = arith.constant 0 : i32
    %c0_i32_0 = arith.constant 0 : i32
    %c0_i32_1 = arith.constant 0 : i32
    return %c0_i32, %c0_i32_0 : i32, i32
  }
  func.func @transform_3(%arg0: i32) -> (i32, i32) {
    %c0_i32 = arith.constant 0 : i32
    %c0_i32_0 = arith.constant 0 : i32
    %c0_i32_1 = arith.constant 0 : i32
    return %c0_i32, %c0_i32_0 : i32, i32
  }
  func.func @transform_4(%arg0: i32) -> (i32, i32) {
    %c0_i32 = arith.constant 0 : i32
    %c0_i32_0 = arith.constant 0 : i32
    %c0_i32_1 = arith.constant 0 : i32
    return %c0_i32, %c0_i32_0 : i32, i32
  }
  func.func @transform_5(%arg0: i32) -> (i32, i32) {
    %c0_i32 = arith.constant 0 : i32
    %c0_i32_0 = arith.constant 0 : i32
    %c0_i32_1 = arith.constant 0 : i32
    return %c0_i32, %c0_i32_0 : i32, i32
  }
  func.func @transform_6(%arg0: i32) -> (i32, i32) {
    %c0_i32 = arith.constant 0 : i32
    %c0_i32_0 = arith.constant 0 : i32
    return %arg0, %c0_i32 : i32, i32
  }
}

</mosaic_0001>

<bundles_post_ra>
// kernel: tpu_custom_call.1
= control target key start
LH: loop header
LB: loop body
LE: loop exit
PB: predicated region body
PF: predicated region fallthrough
CT: control target
= control target key end

     0   :  { %11 = vsyncpa [#allocation4], 0  ;;  %s1760_s0 = inlined_call_operand.hbm [shape: bf16[8,8,16], index: 0, kind: input, shape index: {}]   ;;  %s1761_s1 = inlined_call_operand.hbm [shape: bf16[16,256], index: 1, kind: input, shape index: {}]   ;;  %s1762_s2 = inlined_call_operand.hbm [shape: bf16[64,256], index: 2, kind: input, shape index: {}]   ;;  %s1763_s3 = inlined_call_operand.vmem [shape: f32[1,256], index: 3, kind: input, shape index: {}]   ;;  %s1764_s4 = inlined_call_operand.hbm [shape: f32[64,128], index: 4, kind: input, shape index: {}]   ;;  %s1765_s5 = inlined_call_operand.vmem [shape: f32[1,128], index: 5, kind: input, shape index: {}]   ;;  %s1766_s6 = inlined_call_operand.hbm [shape: f32[8,128], index: 6, kind: output, shape index: {}]  }
   0x1   :  { %12 = vsyncpa [#allocation7], 0 }
   0x2   :  { %13 = vsyncpa [#allocation10], 0  ;;  %s32_s23 = sshll.u32 %s1761_s1, 4  ;;  %s33_s23 = int_to_ptr.hbm [resolvable:$true] %s32_s23 }
   0x3   :  { %14 = vsyncpa [#allocation5], 0  ;;  %s1456_s24 = smov [#allocation6]   ;;  %s19_s28 = sshll.u32 %s1760_s0, 4  ;;  %s20_s28 = int_to_ptr.hbm [resolvable:$true] %s19_s28 }
   0x4   :  { %s34_s25 = sshll.u32 %s1456_s24, 4  ;;  %s1457_s29 = smov 128   ;;  %s35_s25 = int_to_ptr.vmem [resolvable:$true] %s34_s25 }
   0x5   :  { %s1458_s30 = smov 8   ;;  %s1459_s7 = smov [#allocation3]  }
   0x6   :  { %40 = dma.hbm_to_vmem [thread:$0]  %s33_s23, 256, %s35_s25, [#allocation7], %s1457_s29, %s1457_s29, %s1458_s30  }
   0x7   :  { %s21_s8 = sshll.u32 %s1459_s7, 4  ;;  %s1460_s9 = smov 64   ;;  %s22_s8 = int_to_ptr.vmem [resolvable:$true] %s21_s8 }
   0x8   :  { %s1461_s10 = smov 4   ;;  %s45_s12 = sshll.u32 %s1762_s2, 4  ;;  %s46_s12 = int_to_ptr.hbm [resolvable:$true] %s45_s12 }
   0x9   :  { %27 = dma.hbm_to_vmem [thread:$0]  %s20_s28, 512, %s22_s8, [#allocation4], %s1460_s9, %s1460_s9, %s1461_s10  }
   0xa   :  { %s1462_s13 = smov [#allocation8]   ;;  %s60_s16 = sshll.u32 %s1764_s4, 4  ;;  %s61_s16 = int_to_ptr.hbm [resolvable:$true] %s60_s16 }
   0xb   :  { %s47_s14 = sshll.u32 %s1462_s13, 4  ;;  %s1463_s17 = smov [#allocation9]   ;;  %s48_s14 = int_to_ptr.vmem [resolvable:$true] %s47_s14 }
   0xc   :  { %53 = dma.hbm_to_vmem [thread:$0]  %s46_s12, 1024, %s48_s14, [#allocation7], %s1457_s29, %s1457_s29, %s1458_s30  }
   0xd   :  { %s62_s18 = sshll.u32 %s1463_s17, 4  ;;  %s63_s18 = int_to_ptr.vmem [resolvable:$true] %s62_s18 }
   0xe   :  { %68 = dma.hbm_to_vmem [thread:$0]  %s61_s16, 1024, %s63_s18, [#allocation10], %s1457_s29, %s1457_s29, %s1458_s30  }
   0xf   :  { %1448 = dma.done.wait [#allocation4], 512  }
  0x10   :  { %1449 = vsyncadd [#allocation4], 4294966784 }
  0x11   :  { %1450 = dma.done.wait [#allocation7], 1280  }
  0x12   :  { %1451 = vsyncadd [#allocation7], 4294966016 }
  0x13   :  { %1452 = dma.done.wait [#allocation10], 1024  }
  0x14   :  { %1453 = vsyncadd [#allocation10], 4294966272  ;;  %v1130_v0 = vld [vmem:[#allocation6] sm:$0xf]  ;;  %v1208_v1 = vld [vmem:[#allocation6 + $0x4] sm:$0xf0]  ;;  %v91_v47 = vlaneseq }
  0x15   :  { %v1207_v2 = vld [vmem:[#allocation6 + $0x4] sm:$0xf]  ;;  %v1131_v3 = vor.u32 %v1208_v1, %v1130_v0  ;;  %v1132_v4 = vld [vmem:[#allocation6 + $0x8] sm:$0xf0]  ;;  %vm163_vm0 = vcmask 130048   ;;  %v1464_v31 = vmov 0  }
  0x16   :  { %v1135_v5 = vor.u32 %v1207_v2, %v1132_v4  ;;  %v1209_v6 = vld [vmem:[#allocation3] sm:$0xff]  ;;  %v1172_v8 = vld [vmem:[#allocation8 + $0x38] sm:$0xf0]  ;;  %v1217_v10 = vld [vmem:[#allocation8 + $0x24] sm:$0xf]  ;;  %v92_v49 = vand.u32 127, %v91_v47 }
  0x17   :  { %183 = vmatpush.bf16.msra.mxu0 %v1131_v3  ;;  %v1219_v7 = vld [vmem:[#allocation8 + $0x34] sm:$0xf]  ;;  %v1164_v11 = vld [vmem:[#allocation8 + $0x28] sm:$0xf0]  ;;  %v1170_v12 = vld [vmem:[#allocation8 + $0x30] sm:$0xf] }
  0x18   :  { %212 = vmatpush.bf16.msra.mxu1 %v1135_v5  ;;  %v1517_v9 = vor.u32 %v1219_v7, %v1172_v8  ;;  %v1220_v13 = vld [vmem:[#allocation8 + $0x34] sm:$0xf0]  ;;  %v1520_v14 = vor.u32 %v1217_v10, %v1164_v11  ;;  %v1162_v16 = vld [vmem:[#allocation8 + $0x20] sm:$0xf]  ;;  %v1218_v17 = vld [vmem:[#allocation8 + $0x24] sm:$0xf0] }
  0x19   :  { %v1522_v15 = vor.u32 %v1220_v13, %v1170_v12  ;;  %v1215_v18 = vld [vmem:[#allocation8 + $0x14] sm:$0xf]  ;;  %v1156_v19 = vld [vmem:[#allocation8 + $0x18] sm:$0xf0]  ;;  %v1526_v20 = vor.u32 %v1218_v17, %v1162_v16  ;;  %v1213_v22 = vld [vmem:[#allocation8 + $0x4] sm:$0xf] }
  0x1a   :  { %1136 = vmatmul.msk.bf16.vlgmr.msra.gmra.mxu0 %vm163_vm0, %v1209_v6  ;;  %345 = vmatpush.bf16.msra.mxu3 %v1517_v9  ;;  %v1530_v21 = vor.u32 %v1215_v18, %v1156_v19  ;;  %v1148_v23 = vld [vmem:[#allocation8 + $0x8] sm:$0xf0]  ;;  %v1210_v25 = vld [vmem:[#allocation3 + $0x8] sm:$0xff]  ;;  %v1154_v26 = vld [vmem:[#allocation8 + $0x10] sm:$0xf]  ;;  %v93_v54 = vadd.s32 128, %v92_v49 }
  0x1b   :  { %1140 = vmatmul.msk.bf16.vlgmr.msra.gmra.mxu1 %vm163_vm0, %v1209_v6  ;;  %332 = vmatpush.bf16.msra.mxu2 %v1522_v15  ;;  %v1536_v24 = vor.u32 %v1213_v22, %v1148_v23  ;;  %v1216_v27 = vld [vmem:[#allocation8 + $0x14] sm:$0xf0]  ;;  %v1146_v29 = vld [vmem:[#allocation8] sm:$0xf]  ;;  %v1214_v30 = vld [vmem:[#allocation8 + $0x4] sm:$0xf0] }
  0x1c   :  { %713 = vmatpush.bf16.msrb.mxu1 %v1517_v9  ;;  %700 = vmatpush.bf16.msrb.mxu0 %v1522_v15  ;;  %v1544_v28 = vor.u32 %v1216_v27, %v1154_v26  ;;  %v1548_v32 = vor.u32 %v1214_v30, %v1146_v29  ;;  %v1211_v33 = vld [vmem:[#allocation3 + $0x10] sm:$0xff]  ;;  %v1212_v34 = vld [vmem:[#allocation3 + $0x18] sm:$0xff]  ;;  %v90_v37 = vld [vmem:[%s1763_s3] sm:$0x3]  ;;  %v98_v56 = vand.u32 63, %v92_v49  ;;  %v105_v57 = vand.u32 63, %v93_v54 }
  0x1d   :  { %v129_v38 = vperm.slane %v90_v37, 0  ;;  %v130_v39 = vperm.slane %v90_v37, 1  ;;  %vm324_vm11 = vcmask 523264   ;;  %s1465_s20 = smov [#allocation11]   ;;  %s1100_s24 = sshll.u32 %s1766_s6, 4  ;;  %s1101_s24 = int_to_ptr.hbm [resolvable:$true] %s1100_s24 }
  0x1e   :  { %346 = vmatpush.bf16.msra.mxu3 %v1520_v14  ;;  %vm1582_vm1 = vcmp.ge.s32.totalorder %v98_v56, 32  ;;  %vm1586_vm2 = vcmp.ge.s32.totalorder %v105_v57, 32  ;;  %s1098_s21 = sshll.u32 %s1465_s20, 4  ;;  %s1099_s21 = int_to_ptr.vmem [resolvable:$true] %s1098_s21 }
  0x1f   :  { %333 = vmatpush.bf16.msra.mxu2 %v1526_v20 }
  0x20   :  { %714 = vmatpush.bf16.msrb.mxu1 %v1520_v14  ;;  %701 = vmatpush.bf16.msrb.mxu0 %v1526_v20 }
  0x22   :  { %347 = vmatpush.bf16.msra.mxu3 %v1530_v21 }
  0x23   :  { %334 = vmatpush.bf16.msra.mxu2 %v1544_v28 }
  0x24   :  { %715 = vmatpush.bf16.msrb.mxu1 %v1530_v21  ;;  %702 = vmatpush.bf16.msrb.mxu0 %v1544_v28 }
  0x26   :  { %348 = vmatpush.bf16.msra.mxu3 %v1536_v24 }
  0x27   :  { %335 = vmatpush.bf16.msra.mxu2 %v1548_v32 }
  0x28   :  { %716 = vmatpush.bf16.msrb.mxu1 %v1536_v24  ;;  %703 = vmatpush.bf16.msrb.mxu0 %v1548_v32 }
  0x29   :  { %349 = vmatmul.bf16.vlgmr.msra.gmra.mxu3 %v1464_v31 }
  0x2a   :  { %1137 = vmatmul.msk.bf16.gmra.mxu0 %vm163_vm0, %v1210_v25  ;;  %437 = vmatpush.bf16.msrb.mxu3 %v1517_v9 }
  0x2b   :  { %1141 = vmatmul.msk.bf16.gmra.mxu1 %vm163_vm0, %v1210_v25  ;;  %424 = vmatpush.bf16.msrb.mxu2 %v1522_v15 }
  0x2c   :  { %897 = vmatpush.bf16.msra.mxu1 %v1517_v9  ;;  %884 = vmatpush.bf16.msra.mxu0 %v1522_v15 }
  0x2d   :  { %336 = vmatmul.bf16.vlgmr.msra.gmra.mxu2 %v1464_v31 }
  0x2e   :  { %438 = vmatpush.bf16.msrb.mxu3 %v1520_v14 }
  0x2f   :  { %425 = vmatpush.bf16.msrb.mxu2 %v1526_v20 }
  0x30   :  { %898 = vmatpush.bf16.msra.mxu1 %v1520_v14  ;;  %885 = vmatpush.bf16.msra.mxu0 %v1526_v20 }
  0x32   :  { %439 = vmatpush.bf16.msrb.mxu3 %v1530_v21 }
  0x33   :  { %426 = vmatpush.bf16.msrb.mxu2 %v1544_v28 }
  0x34   :  { %899 = vmatpush.bf16.msra.mxu1 %v1530_v21  ;;  %886 = vmatpush.bf16.msra.mxu0 %v1544_v28 }
  0x36   :  { %440 = vmatpush.bf16.msrb.mxu3 %v1536_v24 }
  0x37   :  { %427 = vmatpush.bf16.msrb.mxu2 %v1548_v32 }
  0x38   :  { %900 = vmatpush.bf16.msra.mxu1 %v1536_v24  ;;  %887 = vmatpush.bf16.msra.mxu0 %v1548_v32 }
  0x3a   :  { %529 = vmatpush.bf16.msra.mxu3 %v1517_v9  ;;  %1138 = vmatmul.msk.bf16.gmra.mxu0 %vm163_vm0, %v1211_v33 }
  0x3b   :  { %1142 = vmatmul.msk.bf16.gmra.mxu1 %vm163_vm0, %v1211_v33  ;;  %516 = vmatpush.bf16.msra.mxu2 %v1522_v15 }
  0x3e   :  { %530 = vmatpush.bf16.msra.mxu3 %v1520_v14 }
  0x3f   :  { %517 = vmatpush.bf16.msra.mxu2 %v1526_v20 }
  0x42   :  { %531 = vmatpush.bf16.msra.mxu3 %v1530_v21 }
  0x43   :  { %518 = vmatpush.bf16.msra.mxu2 %v1544_v28 }
  0x46   :  { %532 = vmatpush.bf16.msra.mxu3 %v1536_v24 }
  0x47   :  { %519 = vmatpush.bf16.msra.mxu2 %v1548_v32 }
  0x4a   :  { %1139 = vmatmul.msk.bf16.gmra.mxu0 %vm163_vm0, %v1212_v34 }
  0x4b   :  { %1143 = vmatmul.msk.bf16.gmra.mxu1 %vm163_vm0, %v1212_v34 }
  0x97   :  { %v185_v35 = vpop.f32.mrf.mxu0 }
  0x98   :  { %v214_v36 = vpop.f32.mrf.mxu1 }
  0x99   :  { %v215_v47 = vadd.f32 %v214_v36, %v130_v39 }
  0x9f   :  { %v187_v40 = vpop.f32.mrf.mxu0 }
  0xa0   :  { %v188_v41 = vadd.f32 %v187_v40, %v129_v38  ;;  %v216_v42 = vpop.f32.mrf.mxu1 }
  0xa1   :  { %v217_v43 = vadd.f32 %v216_v42, %v130_v39 }
  0xa7   :  { %v190_v44 = vpop.f32.mrf.mxu0 }
  0xa8   :  { %v191_v45 = vadd.f32 %v190_v44, %v129_v38  ;;  %v219_v46 = vpop.f32.mrf.mxu1  ;;  %v186_v44 = vadd.f32 %v185_v35, %v129_v38 }
  0xa9   :  { %v220_v48 = vadd.f32 %v219_v46, %v130_v39 }
  0xac   :  { %v350_v51 = vpop.f32.mrf.mxu3 }
  0xaf   :  { %v192_v50 = vpop.f32.mrf.mxu0 }
  0xb0   :  { %v193_v52 = vadd.f32 %v192_v50, %v129_v38  ;;  %v221_v53 = vpop.f32.mrf.mxu1  ;;  %v337_v60 = vpop.f32.mrf.mxu2 }
  0xb1   :  { %v222_v55 = vadd.f32 %v221_v53, %v130_v39 }
  0xb4   :  { %v352_v0 = vpop.f32.mrf.mxu3 }
  0xb7   :  { %v195_v59 = vpop.f32.mrf.mxu0 }
  0xb8   :  { %v196_v61 = vadd.f32 %v195_v59, %v129_v38  ;;  %v224_v63 = vpop.f32.mrf.mxu1  ;;  %v339_v10 = vpop.f32.mrf.mxu2 }
  0xb9   :  { %v225_v1 = vadd.f32 %v224_v63, %v130_v39 }
  0xba   :  { %v248_v2 = vsel %vm1582_vm1, %v196_v61, %v193_v52  ;;  %v253_v3 = vsel %vm1582_vm1, %v193_v52, %v196_v61 }
  0xbb   :  { %v249_v4 = vsel %vm1586_vm2, %v225_v1, %v222_v55  ;;  %v254_v5 = vsel %vm1586_vm2, %v222_v55, %v225_v1 }
  0xbc   :  { %v1598_v6 = vpack.c.bf16 %v249_v4, %v248_v2  ;;  %v1600_v7 = vpack.c.bf16 %v254_v5, %v253_v3 }
  0xbf   :  { %v197_v8 = vpop.f32.mrf.mxu0 }
  0xc0   :  { %v198_v11 = vadd.f32 %v197_v8, %v129_v38  ;;  %v226_v12 = vpop.f32.mrf.mxu1 }
  0xc1   :  { %v227_v13 = vadd.f32 %v226_v12, %v130_v39 }
  0xc2   :  { %v243_v16 = vsel %vm1582_vm1, %v198_v11, %v191_v45  ;;  %v258_v17 = vsel %vm1582_vm1, %v191_v45, %v198_v11 }
  0xc3   :  { %v244_v18 = vsel %vm1586_vm2, %v227_v13, %v220_v48  ;;  %v259_v19 = vsel %vm1586_vm2, %v220_v48, %v227_v13 }
  0xc4   :  { %v1610_v22 = vpack.c.bf16 %v244_v18, %v243_v16  ;;  %v1612_v23 = vpack.c.bf16 %v259_v19, %v258_v17 }
  0xc7   :  { %v200_v25 = vpop.f32.mrf.mxu0 }
  0xc8   :  { %v201_v26 = vadd.f32 %v200_v25, %v129_v38  ;;  %v229_v27 = vpop.f32.mrf.mxu1 }
  0xc9   :  { %v230_v29 = vadd.f32 %v229_v27, %v130_v39 }
  0xca   :  { %v238_v30 = vsel %vm1582_vm1, %v201_v26, %v188_v41  ;;  %v263_v31 = vsel %vm1582_vm1, %v188_v41, %v201_v26 }
  0xcb   :  { %v239_v33 = vsel %vm1586_vm2, %v230_v29, %v217_v43  ;;  %v264_v34 = vsel %vm1586_vm2, %v217_v43, %v230_v29 }
  0xcc   :  { %v1622_v37 = vpack.c.bf16 %v239_v33, %v238_v30  ;;  %v1624_v40 = vpack.c.bf16 %v264_v34, %v263_v31 }
  0xcf   :  { %v202_v42 = vpop.f32.mrf.mxu0 }
  0xd0   :  { %v203_v45 = vadd.f32 %v202_v42, %v129_v38  ;;  %v231_v46 = vpop.f32.mrf.mxu1 }
  0xd1   :  { %v232_v48 = vadd.f32 %v231_v46, %v130_v39  ;;  %v415_v46 = vunpack.c.h.bf16 %v1622_v37 }
  0xd2   :  { %v234_v49 = vsel %vm1582_vm1, %v203_v45, %v186_v44  ;;  %v268_v41 = vsel %vm1582_vm1, %v186_v44, %v203_v45  ;;  %v414_v45 = vunpack.c.l.bf16 %v1622_v37 }
  0xd3   :  { %v235_v50 = vsel %vm1586_vm2, %v232_v48, %v215_v47  ;;  %v269_v43 = vsel %vm1586_vm2, %v215_v47, %v232_v48 }
  0xd4   :  { %v236_v52 = vpack.c.bf16 %v235_v50, %v234_v49  ;;  %v1634_v53 = vpack.c.bf16 %v269_v43, %v268_v41 }
  0xd6   :  { %v282_v35 = vunpack.c.l.bf16 %v236_v52  ;;  %v283_v38 = vunpack.c.h.bf16 %v236_v52 }
  0xd8   :  { %v354_v54 = vadd.f32 %v337_v60, %v282_v35  ;;  %v355_v36 = vadd.f32 %v350_v51, %v283_v38 }
  0xda   :  { %1232 = vtanh.f32 %v355_v36  ;;  %v1176_v55 = vmul.f32 -1.442695, %v354_v54  ;;  %v1177_v12 = vmul.f32 -1.442695, %v355_v36 }
  0xdc   :  { %1234 = vpow2.f32 %v1176_v55 }
  0xe0   :  { %v1233_v39 = vpop.eup %1232 }
  0xe1   :  { %397 = vrot.lane.b32.xlu0 %v1233_v39, %s1460_s9 }
  0xe2   :  { %v1235_v56 = vpop.eup %1234 }
  0xe3   :  { %v362_v57 = vadd.f32 1.0, %v1235_v56 }
  0xe5   :  { %1236 = vrcp.f32 %v362_v57  ;;  %v375_v0 = vand.u32 2147483648, %v362_v57  ;;  %vm369_vm4 = vweird.f32 %v362_v57  ;;  %v373_v1 = vand.u32 2147483647, %v362_v57 }
  0xe7   :  { %v376_v60 = vor.u32 1.1754944e-38, %v375_v0  ;;  %vm374_vm6 = vcmp.eq.f32.partialorder %v373_v1, 8.507059e+37 }
  0xeb   :  { %v1237_v58 = vpop.eup %1236 }
  0xec   :  { %v365_v59 = vmul.f32 %v1237_v58, %v362_v57  ;;  %vm370_vm3 = vweird.f32 %v1237_v58 }
  0xed   :  { %vm371_vm5 = vmor %vm369_vm4, %vm370_vm3 }
  0xee   :  { %v366_v61 = vsub.f32 1.0, %v365_v59 }
  0xf0   :  { %v367_v62 = vmul.f32 %v1237_v58, %v366_v61 }
  0xf2   :  { %v368_v63 = vadd.f32 %v1237_v58, %v367_v62 }
  0xf4   :  { %v372_v51 = vsel %vm371_vm5, %v1237_v58, %v368_v63 }
  0xf5   :  { %v377_v3 = vsel %vm374_vm6, %v376_v60, %v372_v51 }
  0xf6   :  { %v395_v5 = vmul.f32 0.0, %v377_v3 }
 0x153   :  { %v398_v2 = vpop.permute.xlu0 %397 }
 0x154   :  { %v400_v4 = vmul.f32 %v398_v2, %v377_v3 }
 0x156   :  { %402 = vrot.lane.b32.xlu0 %v400_v4, %s1460_s9 }
 0x1c8   :  { %v403_v8 = vpop.permute.xlu0 %402 }
 0x1c9   :  { %v1638_v10 = vadd.f32 %v403_v8, %v395_v5 }
 0x1cb   :  { %1238 = vtanh.f32 %v1638_v10 }
 0x1cc   :  { %1240 = vpow2.f32 %v1177_v12 }
 0x1d1   :  { %v1239_v11 = vpop.eup %1238 }
 0x1d2   :  { %408 = vrot.lane.b32.xlu1 %v1239_v11, %s1460_s9  ;;  %v1241_v13 = vpop.eup %1240 }
 0x1d3   :  { %v363_v16 = vadd.f32 1.0, %v1241_v13 }
 0x1d5   :  { %1242 = vrcp.f32 %v363_v16  ;;  %v390_v27 = vand.u32 2147483648, %v363_v16  ;;  %vm384_vm8 = vweird.f32 %v363_v16  ;;  %v388_v29 = vand.u32 2147483647, %v363_v16 }
 0x1d7   :  { %v391_v31 = vor.u32 1.1754944e-38, %v390_v27  ;;  %vm389_vm10 = vcmp.eq.f32.partialorder %v388_v29, 8.507059e+37 }
 0x1db   :  { %v1243_v17 = vpop.eup %1242 }
 0x1dc   :  { %v380_v18 = vmul.f32 %v1243_v17, %v363_v16  ;;  %vm385_vm7 = vweird.f32 %v1243_v17 }
 0x1dd   :  { %vm386_vm9 = vmor %vm384_vm8, %vm385_vm7 }
 0x1de   :  { %v381_v19 = vsub.f32 1.0, %v380_v18 }
 0x1e0   :  { %v382_v25 = vmul.f32 %v1243_v17, %v381_v19 }
 0x1e2   :  { %v383_v26 = vadd.f32 %v1243_v17, %v382_v25 }
 0x1e4   :  { %v387_v30 = vsel %vm386_vm9, %v1243_v17, %v383_v26 }
 0x1e5   :  { %v392_v33 = vsel %vm389_vm10, %v391_v31, %v387_v30  ;;  %v506_v30 = vunpack.c.l.bf16 %v1610_v22  ;;  %v507_v31 = vunpack.c.h.bf16 %v1610_v22 }
 0x244   :  { %v409_v34 = vpop.permute.xlu1 %408 }
 0x245   :  { %v1642_v42 = vmul.f32 %v409_v34, %v392_v33 }
 0x247   :  { %v416_v44 = vpack.c.bf16 %v1642_v42, %v1642_v42 }
 0x249   :  { %1178 = vmatmul.msk.bf16.vlgmr.msrb.gmra.mxu2 %vm324_vm11, %v416_v44  ;;  %1179 = vmatmul.msk.bf16.vlgmr.msrb.gmra.mxu3 %vm324_vm11, %v416_v44 }
 0x24a   :  { %621 = vmatpush.bf16.msrb.mxu3 %v1517_v9  ;;  %608 = vmatpush.bf16.msrb.mxu2 %v1522_v15 }
 0x24e   :  { %622 = vmatpush.bf16.msrb.mxu3 %v1520_v14  ;;  %609 = vmatpush.bf16.msrb.mxu2 %v1526_v20 }
 0x252   :  { %623 = vmatpush.bf16.msrb.mxu3 %v1530_v21  ;;  %610 = vmatpush.bf16.msrb.mxu2 %v1544_v28 }
 0x256   :  { %624 = vmatpush.bf16.msrb.mxu3 %v1536_v24  ;;  %611 = vmatpush.bf16.msrb.mxu2 %v1548_v32 }
 0x2cc   :  { %v429_v47 = vpop.f32.mrf.mxu2  ;;  %v442_v48 = vpop.f32.mrf.mxu3 }
 0x2cd   :  { %v446_v49 = vadd.f32 %v429_v47, %v414_v45  ;;  %v447_v41 = vadd.f32 %v442_v48, %v415_v46 }
 0x2cf   :  { %1244 = vtanh.f32 %v447_v41  ;;  %v1180_v35 = vmul.f32 -1.442695, %v446_v49  ;;  %v1181_v3 = vmul.f32 -1.442695, %v447_v41 }
 0x2d1   :  { %1246 = vpow2.f32 %v1180_v35 }
 0x2d4   :  { %v431_v50 = vpop.f32.mrf.mxu2  ;;  %v444_v43 = vpop.f32.mrf.mxu3 }
 0x2d5   :  { %v1245_v52 = vpop.eup %1244 }
 0x2d6   :  { %489 = vrot.lane.b32.xlu1 %v1245_v52, %s1460_s9 }
 0x2d7   :  { %v1247_v38 = vpop.eup %1246 }
 0x2d8   :  { %v454_v54 = vadd.f32 1.0, %v1247_v38 }
 0x2da   :  { %1248 = vrcp.f32 %v454_v54  ;;  %v467_v57 = vand.u32 2147483648, %v454_v54  ;;  %vm461_vm13 = vweird.f32 %v454_v54  ;;  %v465_v58 = vand.u32 2147483647, %v454_v54 }
 0x2dc   :  { %v468_v61 = vor.u32 1.1754944e-38, %v467_v57  ;;  %vm466_vm15 = vcmp.eq.f32.partialorder %v465_v58, 8.507059e+37 }
 0x2e0   :  { %v1249_v36 = vpop.eup %1248 }
 0x2e1   :  { %v457_v39 = vmul.f32 %v1249_v36, %v454_v54  ;;  %vm462_vm12 = vweird.f32 %v1249_v36 }
 0x2e2   :  { %vm463_vm14 = vmor %vm461_vm13, %vm462_vm12 }
 0x2e3   :  { %v458_v55 = vsub.f32 1.0, %v457_v39 }
 0x2e5   :  { %v459_v56 = vmul.f32 %v1249_v36, %v458_v55 }
 0x2e7   :  { %v460_v37 = vadd.f32 %v1249_v36, %v459_v56 }
 0x2e9   :  { %v464_v59 = vsel %vm463_vm14, %v1249_v36, %v460_v37 }
 0x2ea   :  { %v469_v63 = vsel %vm466_vm15, %v468_v61, %v464_v59 }
 0x2eb   :  { %v487_v1 = vmul.f32 %v469_v63, %v1638_v10 }
 0x348   :  { %v490_v62 = vpop.permute.xlu1 %489 }
 0x349   :  { %v492_v0 = vmul.f32 %v490_v62, %v469_v63 }
 0x34b   :  { %494 = vrot.lane.b32.xlu2 %v492_v0, %s1460_s9 }
 0x3a5   :  { %v495_v51 = vpop.permute.xlu2 %494 }
 0x3a6   :  { %v1661_v60 = vadd.f32 %v495_v51, %v487_v1 }
 0x3a8   :  { %1250 = vtanh.f32 %v1661_v60 }
 0x3a9   :  { %1252 = vpow2.f32 %v1181_v3 }
 0x3ae   :  { %v1251_v2 = vpop.eup %1250 }
 0x3af   :  { %500 = vrot.lane.b32.xlu2 %v1251_v2, %s1460_s9  ;;  %v1253_v4 = vpop.eup %1252 }
 0x3b0   :  { %v455_v5 = vadd.f32 1.0, %v1253_v4 }
 0x3b2   :  { %1254 = vrcp.f32 %v455_v5  ;;  %v482_v10 = vand.u32 2147483648, %v455_v5  ;;  %vm476_vm1 = vweird.f32 %v455_v5  ;;  %v480_v17 = vand.u32 2147483647, %v455_v5 }
 0x3b4   :  { %v483_v19 = vor.u32 1.1754944e-38, %v482_v10  ;;  %vm481_vm3 = vcmp.eq.f32.partialorder %v480_v17, 8.507059e+37 }
 0x3b8   :  { %v1255_v8 = vpop.eup %1254 }
 0x3b9   :  { %v472_v11 = vmul.f32 %v1255_v8, %v455_v5  ;;  %vm477_vm0 = vweird.f32 %v1255_v8 }
 0x3ba   :  { %vm478_vm2 = vmor %vm476_vm1, %vm477_vm0 }
 0x3bb   :  { %v473_v12 = vsub.f32 1.0, %v472_v11 }
 0x3bd   :  { %v474_v13 = vmul.f32 %v1255_v8, %v473_v12 }
 0x3bf   :  { %v475_v16 = vadd.f32 %v1255_v8, %v474_v13 }
 0x3c1   :  { %v479_v18 = vsel %vm478_vm2, %v1255_v8, %v475_v16 }
 0x3c2   :  { %v484_v25 = vsel %vm481_vm3, %v483_v19, %v479_v18 }
 0x409   :  { %v501_v26 = vpop.permute.xlu2 %500 }
 0x40a   :  { %v1665_v27 = vmul.f32 %v501_v26, %v484_v25  ;;  %v599_v25 = vunpack.c.h.bf16 %v1598_v6 }
 0x40c   :  { %v508_v29 = vpack.c.bf16 %v1665_v27, %v1665_v27  ;;  %v504_v10 = vadd.f32 %v1665_v27, %v1642_v42  ;;  %v598_v42 = vunpack.c.l.bf16 %v1598_v6 }
 0x40e   :  { %1182 = vmatmul.msk.bf16.vlgmr.msra.gmra.mxu2 %vm324_vm11, %v508_v29  ;;  %1183 = vmatmul.msk.bf16.vlgmr.msra.gmra.mxu3 %vm324_vm11, %v508_v29 }
 0x40f   :  { %805 = vmatpush.bf16.msra.mxu3 %v1517_v9  ;;  %792 = vmatpush.bf16.msra.mxu2 %v1522_v15 }
 0x413   :  { %806 = vmatpush.bf16.msra.mxu3 %v1520_v14  ;;  %793 = vmatpush.bf16.msra.mxu2 %v1526_v20 }
 0x417   :  { %807 = vmatpush.bf16.msra.mxu3 %v1530_v21  ;;  %794 = vmatpush.bf16.msra.mxu2 %v1544_v28 }
 0x41b   :  { %808 = vmatpush.bf16.msra.mxu3 %v1536_v24  ;;  %795 = vmatpush.bf16.msra.mxu2 %v1548_v32 }
 0x491   :  { %v521_v33 = vpop.f32.mrf.mxu2  ;;  %v534_v34 = vpop.f32.mrf.mxu3 }
 0x492   :  { %v538_v44 = vadd.f32 %v521_v33, %v506_v30  ;;  %v539_v45 = vadd.f32 %v534_v34, %v507_v31 }
 0x494   :  { %1256 = vtanh.f32 %v539_v45  ;;  %v1184_v49 = vmul.f32 -1.442695, %v538_v44  ;;  %v1185_v63 = vmul.f32 -1.442695, %v539_v45 }
 0x496   :  { %1258 = vpow2.f32 %v1184_v49 }
 0x499   :  { %v523_v46 = vpop.f32.mrf.mxu2  ;;  %v536_v47 = vpop.f32.mrf.mxu3 }
 0x49a   :  { %v1257_v48 = vpop.eup %1256 }
 0x49b   :  { %581 = vrot.lane.b32.xlu0 %v1257_v48, %s1460_s9 }
 0x49c   :  { %v1259_v41 = vpop.eup %1258 }
 0x49d   :  { %v546_v50 = vadd.f32 1.0, %v1259_v41 }
 0x49f   :  { %1260 = vrcp.f32 %v546_v50  ;;  %v559_v54 = vand.u32 2147483648, %v546_v50  ;;  %vm553_vm5 = vweird.f32 %v546_v50  ;;  %v557_v36 = vand.u32 2147483647, %v546_v50 }
 0x4a1   :  { %v560_v55 = vor.u32 1.1754944e-38, %v559_v54  ;;  %vm558_vm7 = vcmp.eq.f32.partialorder %v557_v36, 8.507059e+37 }
 0x4a5   :  { %v1261_v43 = vpop.eup %1260 }
 0x4a6   :  { %v549_v52 = vmul.f32 %v1261_v43, %v546_v50  ;;  %vm554_vm4 = vweird.f32 %v1261_v43 }
 0x4a7   :  { %vm555_vm6 = vmor %vm553_vm5, %vm554_vm4 }
 0x4a8   :  { %v550_v35 = vsub.f32 1.0, %v549_v52 }
 0x4aa   :  { %v551_v38 = vmul.f32 %v1261_v43, %v550_v35 }
 0x4ac   :  { %v552_v22 = vadd.f32 %v1261_v43, %v551_v38 }
 0x4ae   :  { %v556_v39 = vsel %vm555_vm6, %v1261_v43, %v552_v22 }
 0x4af   :  { %v561_v37 = vsel %vm558_vm7, %v560_v55, %v556_v39 }
 0x4b0   :  { %v579_v58 = vmul.f32 %v561_v37, %v1661_v60 }
 0x50d   :  { %v582_v56 = vpop.permute.xlu0 %581 }
 0x50e   :  { %v584_v57 = vmul.f32 %v582_v56, %v561_v37 }
 0x510   :  { %586 = vrot.lane.b32.xlu1 %v584_v57, %s1460_s9 }
 0x582   :  { %v587_v59 = vpop.permute.xlu1 %586 }
 0x583   :  { %v1684_v61 = vadd.f32 %v587_v59, %v579_v58 }
 0x585   :  { %1262 = vtanh.f32 %v1684_v61 }
 0x586   :  { %1264 = vpow2.f32 %v1185_v63 }
 0x58b   :  { %v1263_v62 = vpop.eup %1262 }
 0x58c   :  { %592 = vrot.lane.b32.xlu2 %v1263_v62, %s1460_s9  ;;  %v1265_v0 = vpop.eup %1264 }
 0x58d   :  { %v547_v1 = vadd.f32 1.0, %v1265_v0 }
 0x58f   :  { %1266 = vrcp.f32 %v547_v1  ;;  %v574_v60 = vand.u32 2147483648, %v547_v1  ;;  %vm568_vm9 = vweird.f32 %v547_v1  ;;  %v572_v8 = vand.u32 2147483647, %v547_v1 }
 0x591   :  { %v575_v12 = vor.u32 1.1754944e-38, %v574_v60  ;;  %vm573_vm12 = vcmp.eq.f32.partialorder %v572_v8, 8.507059e+37 }
 0x595   :  { %v1267_v51 = vpop.eup %1266 }
 0x596   :  { %v564_v2 = vmul.f32 %v1267_v51, %v547_v1  ;;  %vm569_vm8 = vweird.f32 %v1267_v51 }
 0x597   :  { %vm570_vm10 = vmor %vm568_vm9, %vm569_vm8 }
 0x598   :  { %v565_v3 = vsub.f32 1.0, %v564_v2  ;;  %v691_v2 = vunpack.c.h.bf16 %v1600_v7 }
 0x59a   :  { %v566_v4 = vmul.f32 %v1267_v51, %v565_v3 }
 0x59c   :  { %v567_v5 = vadd.f32 %v1267_v51, %v566_v4 }
 0x59e   :  { %v571_v11 = vsel %vm570_vm10, %v1267_v51, %v567_v5  ;;  %v690_v51 = vunpack.c.l.bf16 %v1600_v7 }
 0x59f   :  { %v576_v13 = vsel %vm573_vm12, %v575_v12, %v571_v11 }
 0x5e6   :  { %v593_v16 = vpop.permute.xlu2 %592 }
 0x5e7   :  { %v595_v17 = vmul.f32 %v593_v16, %v576_v13 }
 0x5e9   :  { %v1690_v18 = vadd.f32 %v595_v17, %v504_v10  ;;  %v600_v19 = vpack.c.bf16 %v595_v17, %v595_v17 }
 0x5eb   :  { %1186 = vmatmul.msk.bf16.vlgmr.msrb.gmra.mxu2 %vm324_vm11, %v600_v19  ;;  %1187 = vmatmul.msk.bf16.vlgmr.msrb.gmra.mxu3 %vm324_vm11, %v600_v19 }
 0x5ec   :  { %989 = vmatpush.bf16.msrb.mxu3 %v1517_v9  ;;  %976 = vmatpush.bf16.msrb.mxu2 %v1522_v15 }
 0x5f0   :  { %990 = vmatpush.bf16.msrb.mxu3 %v1520_v14  ;;  %977 = vmatpush.bf16.msrb.mxu2 %v1526_v20 }
 0x5f4   :  { %991 = vmatpush.bf16.msrb.mxu3 %v1530_v21  ;;  %978 = vmatpush.bf16.msrb.mxu2 %v1544_v28 }
 0x5f8   :  { %992 = vmatpush.bf16.msrb.mxu3 %v1536_v24  ;;  %979 = vmatpush.bf16.msrb.mxu2 %v1548_v32 }
 0x66e   :  { %v613_v26 = vpop.f32.mrf.mxu2  ;;  %v626_v9 = vpop.f32.mrf.mxu3 }
 0x66f   :  { %v630_v27 = vadd.f32 %v613_v26, %v598_v42  ;;  %v631_v15 = vadd.f32 %v626_v9, %v599_v25 }
 0x671   :  { %1268 = vtanh.f32 %v631_v15  ;;  %v1188_v21 = vmul.f32 -1.442695, %v630_v27  ;;  %v1189_v35 = vmul.f32 -1.442695, %v631_v15 }
 0x673   :  { %1270 = vpow2.f32 %v1188_v21 }
 0x676   :  { %v615_v14 = vpop.f32.mrf.mxu2  ;;  %v628_v29 = vpop.f32.mrf.mxu3 }
 0x677   :  { %v1269_v20 = vpop.eup %1268 }
 0x678   :  { %673 = vrot.lane.b32.xlu0 %v1269_v20, %s1460_s9 }
 0x679   :  { %v1271_v28 = vpop.eup %1270 }
 0x67a   :  { %v638_v24 = vadd.f32 1.0, %v1271_v28 }
 0x67c   :  { %1272 = vrcp.f32 %v638_v24  ;;  %v651_v34 = vand.u32 2147483648, %v638_v24  ;;  %vm645_vm14 = vweird.f32 %v638_v24  ;;  %v649_v44 = vand.u32 2147483647, %v638_v24 }
 0x67e   :  { %v652_v46 = vor.u32 1.1754944e-38, %v651_v34  ;;  %vm650_vm0 = vcmp.eq.f32.partialorder %v649_v44, 8.507059e+37 }
 0x682   :  { %v1273_v32 = vpop.eup %1272 }
 0x683   :  { %v641_v30 = vmul.f32 %v1273_v32, %v638_v24  ;;  %vm646_vm13 = vweird.f32 %v1273_v32 }
 0x684   :  { %vm647_vm15 = vmor %vm645_vm14, %vm646_vm13 }
 0x685   :  { %v642_v31 = vsub.f32 1.0, %v641_v30 }
 0x687   :  { %v643_v33 = vmul.f32 %v1273_v32, %v642_v31 }
 0x689   :  { %v644_v6 = vadd.f32 %v1273_v32, %v643_v33 }
 0x68b   :  { %v648_v45 = vsel %vm647_vm15, %v1273_v32, %v644_v6 }
 0x68c   :  { %v653_v48 = vsel %vm650_vm0, %v652_v46, %v648_v45 }
 0x68d   :  { %v671_v41 = vmul.f32 %v653_v48, %v1684_v61 }
 0x6ea   :  { %v674_v47 = vpop.permute.xlu0 %673 }
 0x6eb   :  { %v676_v49 = vmul.f32 %v674_v47, %v653_v48 }
 0x6ed   :  { %678 = vrot.lane.b32.xlu1 %v676_v49, %s1460_s9 }
 0x75f   :  { %v679_v50 = vpop.permute.xlu1 %678 }
 0x760   :  { %v681_v43 = vadd.f32 %v679_v50, %v671_v41 }
 0x762   :  { %1274 = vtanh.f32 %v681_v43 }
 0x763   :  { %1276 = vpow2.f32 %v1189_v35 }
 0x768   :  { %v1275_v52 = vpop.eup %1274 }
 0x769   :  { %684 = vrot.lane.b32.xlu2 %v1275_v52, %s1460_s9  ;;  %v1277_v38 = vpop.eup %1276 }
 0x76a   :  { %v639_v22 = vadd.f32 1.0, %v1277_v38  ;;  %v782_v38 = vunpack.c.l.bf16 %v1612_v23 }
 0x76c   :  { %1278 = vrcp.f32 %v639_v22  ;;  %v666_v37 = vand.u32 2147483648, %v639_v22  ;;  %vm660_vm2 = vweird.f32 %v639_v22  ;;  %v664_v57 = vand.u32 2147483647, %v639_v22 }
 0x76e   :  { %v667_v59 = vor.u32 1.1754944e-38, %v666_v37  ;;  %vm665_vm4 = vcmp.eq.f32.partialorder %v664_v57, 8.507059e+37 }
 0x772   :  { %v1279_v54 = vpop.eup %1278 }
 0x773   :  { %v656_v36 = vmul.f32 %v1279_v54, %v639_v22  ;;  %vm661_vm1 = vweird.f32 %v1279_v54  ;;  %v783_v22 = vunpack.c.h.bf16 %v1612_v23 }
 0x774   :  { %vm662_vm3 = vmor %vm660_vm2, %vm661_vm1 }
 0x775   :  { %v657_v39 = vsub.f32 1.0, %v656_v36 }
 0x777   :  { %v658_v55 = vmul.f32 %v1279_v54, %v657_v39 }
 0x779   :  { %v659_v56 = vadd.f32 %v1279_v54, %v658_v55 }
 0x77b   :  { %v663_v58 = vsel %vm662_vm3, %v1279_v54, %v659_v56 }
 0x77c   :  { %v668_v61 = vsel %vm665_vm4, %v667_v59, %v663_v58 }
 0x7c3   :  { %v685_v62 = vpop.permute.xlu2 %684 }
 0x7c4   :  { %v687_v63 = vmul.f32 %v685_v62, %v668_v61 }
 0x7c6   :  { %v1709_v0 = vadd.f32 %v687_v63, %v1690_v18  ;;  %v692_v1 = vpack.c.bf16 %v687_v63, %v687_v63 }
 0x7c8   :  { %1190 = vmatmul.msk.bf16.vlgmr.msrb.gmra.mxu0 %vm324_vm11, %v692_v1  ;;  %1191 = vmatmul.msk.bf16.vlgmr.msrb.gmra.mxu1 %vm324_vm11, %v692_v1 }
 0x845   :  { %v705_v3 = vpop.f32.mrf.mxu0  ;;  %v718_v4 = vpop.f32.mrf.mxu1 }
 0x846   :  { %v722_v5 = vadd.f32 %v705_v3, %v690_v51  ;;  %v723_v60 = vadd.f32 %v718_v4, %v691_v2 }
 0x848   :  { %1280 = vtanh.f32 %v723_v60  ;;  %v1192_v13 = vmul.f32 -1.442695, %v722_v5  ;;  %v1193_v32 = vmul.f32 -1.442695, %v723_v60 }
 0x84a   :  { %1282 = vpow2.f32 %v1192_v13 }
 0x84d   :  { %v707_v8 = vpop.f32.mrf.mxu0  ;;  %v720_v11 = vpop.f32.mrf.mxu1 }
 0x84e   :  { %v1281_v12 = vpop.eup %1280 }
 0x84f   :  { %765 = vrot.lane.b32.xlu0 %v1281_v12, %s1460_s9 }
 0x850   :  { %v1283_v16 = vpop.eup %1282 }
 0x851   :  { %v730_v10 = vadd.f32 1.0, %v1283_v16 }
 0x853   :  { %1284 = vrcp.f32 %v730_v10  ;;  %v743_v25 = vand.u32 2147483648, %v730_v10  ;;  %vm737_vm6 = vweird.f32 %v730_v10  ;;  %v741_v26 = vand.u32 2147483647, %v730_v10 }
 0x855   :  { %v744_v27 = vor.u32 1.1754944e-38, %v743_v25  ;;  %vm742_vm8 = vcmp.eq.f32.partialorder %v741_v26, 8.507059e+37 }
 0x859   :  { %v1285_v17 = vpop.eup %1284 }
 0x85a   :  { %v733_v18 = vmul.f32 %v1285_v17, %v730_v10  ;;  %vm738_vm5 = vweird.f32 %v1285_v17 }
 0x85b   :  { %vm739_vm7 = vmor %vm737_vm6, %vm738_vm5 }
 0x85c   :  { %v734_v19 = vsub.f32 1.0, %v733_v18 }
 0x85e   :  { %v735_v42 = vmul.f32 %v1285_v17, %v734_v19 }
 0x860   :  { %v736_v7 = vadd.f32 %v1285_v17, %v735_v42 }
 0x862   :  { %v740_v9 = vsel %vm739_vm7, %v1285_v17, %v736_v7 }
 0x863   :  { %v745_v14 = vsel %vm742_vm8, %v744_v27, %v740_v9 }
 0x864   :  { %v763_v20 = vmul.f32 %v745_v14, %v681_v43 }
 0x8c1   :  { %v766_v15 = vpop.permute.xlu0 %765 }
 0x8c2   :  { %v768_v29 = vmul.f32 %v766_v15, %v745_v14 }
 0x8c4   :  { %770 = vrot.lane.b32.xlu1 %v768_v29, %s1460_s9 }
 0x936   :  { %v771_v21 = vpop.permute.xlu1 %770 }
 0x937   :  { %v773_v28 = vadd.f32 %v771_v21, %v763_v20 }
 0x939   :  { %1286 = vtanh.f32 %v773_v28 }
 0x93a   :  { %1288 = vpow2.f32 %v1193_v32  ;;  %v874_v32 = vunpack.c.l.bf16 %v1624_v40 }
 0x93f   :  { %v1287_v24 = vpop.eup %1286 }
 0x940   :  { %776 = vrot.lane.b32.xlu2 %v1287_v24, %s1460_s9  ;;  %v1289_v30 = vpop.eup %1288 }
 0x941   :  { %v731_v31 = vadd.f32 1.0, %v1289_v30  ;;  %v875_v30 = vunpack.c.h.bf16 %v1624_v40 }
 0x943   :  { %1290 = vrcp.f32 %v731_v31  ;;  %v758_v46 = vand.u32 2147483648, %v731_v31  ;;  %vm752_vm10 = vweird.f32 %v731_v31  ;;  %v756_v47 = vand.u32 2147483647, %v731_v31 }
 0x945   :  { %v759_v49 = vor.u32 1.1754944e-38, %v758_v46  ;;  %vm757_vm13 = vcmp.eq.f32.partialorder %v756_v47, 8.507059e+37 }
 0x949   :  { %v1291_v33 = vpop.eup %1290 }
 0x94a   :  { %v748_v6 = vmul.f32 %v1291_v33, %v731_v31  ;;  %vm753_vm9 = vweird.f32 %v1291_v33 }
 0x94b   :  { %vm754_vm12 = vmor %vm752_vm10, %vm753_vm9 }
 0x94c   :  { %v749_v34 = vsub.f32 1.0, %v748_v6 }
 0x94e   :  { %v750_v44 = vmul.f32 %v1291_v33, %v749_v34 }
 0x950   :  { %v751_v45 = vadd.f32 %v1291_v33, %v750_v44 }
 0x952   :  { %v755_v48 = vsel %vm754_vm12, %v1291_v33, %v751_v45 }
 0x953   :  { %v760_v41 = vsel %vm757_vm13, %v759_v49, %v755_v48 }
 0x99a   :  { %v777_v50 = vpop.permute.xlu2 %776 }
 0x99b   :  { %v779_v43 = vmul.f32 %v777_v50, %v760_v41 }
 0x99d   :  { %v1719_v52 = vadd.f32 %v779_v43, %v1709_v0  ;;  %v784_v35 = vpack.c.bf16 %v779_v43, %v779_v43 }
 0x99f   :  { %1194 = vmatmul.msk.bf16.vlgmr.msra.gmra.mxu2 %vm324_vm11, %v784_v35  ;;  %1195 = vmatmul.msk.bf16.vlgmr.msra.gmra.mxu3 %vm324_vm11, %v784_v35 }
 0xa22   :  { %v797_v54 = vpop.f32.mrf.mxu2  ;;  %v810_v36 = vpop.f32.mrf.mxu3 }
 0xa23   :  { %v814_v39 = vadd.f32 %v797_v54, %v782_v38  ;;  %v815_v55 = vadd.f32 %v810_v36, %v783_v22 }
 0xa25   :  { %1292 = vtanh.f32 %v815_v55  ;;  %v1196_v58 = vmul.f32 -1.442695, %v814_v39  ;;  %v1197_v10 = vmul.f32 -1.442695, %v815_v55 }
 0xa27   :  { %1294 = vpow2.f32 %v1196_v58 }
 0xa2a   :  { %v799_v56 = vpop.f32.mrf.mxu2  ;;  %v812_v37 = vpop.f32.mrf.mxu3 }
 0xa2b   :  { %v1293_v57 = vpop.eup %1292 }
 0xa2c   :  { %857 = vrot.lane.b32.xlu0 %v1293_v57, %s1460_s9 }
 0xa2d   :  { %v1295_v59 = vpop.eup %1294 }
 0xa2e   :  { %v822_v61 = vadd.f32 1.0, %v1295_v59 }
 0xa30   :  { %1296 = vrcp.f32 %v822_v61  ;;  %v835_v51 = vand.u32 2147483648, %v822_v61  ;;  %vm829_vm15 = vweird.f32 %v822_v61  ;;  %v833_v2 = vand.u32 2147483647, %v822_v61 }
 0xa32   :  { %v836_v4 = vor.u32 1.1754944e-38, %v835_v51  ;;  %vm834_vm1 = vcmp.eq.f32.partialorder %v833_v2, 8.507059e+37 }
 0xa36   :  { %v1297_v62 = vpop.eup %1296 }
 0xa37   :  { %v825_v63 = vmul.f32 %v1297_v62, %v822_v61  ;;  %vm830_vm14 = vweird.f32 %v1297_v62 }
 0xa38   :  { %vm831_vm0 = vmor %vm829_vm15, %vm830_vm14 }
 0xa39   :  { %v826_v0 = vsub.f32 1.0, %v825_v63 }
 0xa3b   :  { %v827_v1 = vmul.f32 %v1297_v62, %v826_v0 }
 0xa3d   :  { %v828_v23 = vadd.f32 %v1297_v62, %v827_v1 }
 0xa3f   :  { %v832_v3 = vsel %vm831_vm0, %v1297_v62, %v828_v23 }
 0xa40   :  { %v837_v60 = vsel %vm834_vm1, %v836_v4, %v832_v3 }
 0xa41   :  { %v855_v11 = vmul.f32 %v837_v60, %v773_v28 }
 0xa9e   :  { %v858_v5 = vpop.permute.xlu0 %857 }
 0xa9f   :  { %v860_v8 = vmul.f32 %v858_v5, %v837_v60 }
 0xaa1   :  { %862 = vrot.lane.b32.xlu1 %v860_v8, %s1460_s9 }
 0xb13   :  { %v863_v12 = vpop.permute.xlu1 %862 }
 0xb14   :  { %v865_v13 = vadd.f32 %v863_v12, %v855_v11 }
 0xb16   :  { %1298 = vtanh.f32 %v865_v13 }
 0xb17   :  { %1300 = vpow2.f32 %v1197_v10  ;;  %v967_v10 = vunpack.c.h.bf16 %v1634_v53 }
 0xb1c   :  { %v1299_v16 = vpop.eup %1298 }
 0xb1d   :  { %868 = vrot.lane.b32.xlu2 %v1299_v16, %s1460_s9  ;;  %v1301_v17 = vpop.eup %1300  ;;  %v966_v16 = vunpack.c.l.bf16 %v1634_v53 }
 0xb1e   :  { %v823_v18 = vadd.f32 1.0, %v1301_v17 }
 0xb20   :  { %1302 = vrcp.f32 %v823_v18  ;;  %v850_v9 = vand.u32 2147483648, %v823_v18  ;;  %vm844_vm3 = vweird.f32 %v823_v18  ;;  %v848_v27 = vand.u32 2147483647, %v823_v18 }
 0xb22   :  { %v851_v14 = vor.u32 1.1754944e-38, %v850_v9  ;;  %vm849_vm5 = vcmp.eq.f32.partialorder %v848_v27, 8.507059e+37 }
 0xb26   :  { %v1303_v19 = vpop.eup %1302 }
 0xb27   :  { %v840_v42 = vmul.f32 %v1303_v19, %v823_v18  ;;  %vm845_vm2 = vweird.f32 %v1303_v19 }
 0xb28   :  { %vm846_vm4 = vmor %vm844_vm3, %vm845_vm2 }
 0xb29   :  { %v841_v7 = vsub.f32 1.0, %v840_v42 }
 0xb2b   :  { %v842_v25 = vmul.f32 %v1303_v19, %v841_v7 }
 0xb2d   :  { %v843_v26 = vadd.f32 %v1303_v19, %v842_v25 }
 0xb2f   :  { %v847_v15 = vsel %vm846_vm4, %v1303_v19, %v843_v26 }
 0xb30   :  { %v852_v29 = vsel %vm849_vm5, %v851_v14, %v847_v15 }
 0xb77   :  { %v869_v20 = vpop.permute.xlu2 %868 }
 0xb78   :  { %v871_v21 = vmul.f32 %v869_v20, %v852_v29 }
 0xb7a   :  { %v1729_v28 = vadd.f32 %v871_v21, %v1719_v52  ;;  %v876_v24 = vpack.c.bf16 %v871_v21, %v871_v21 }
 0xb7c   :  { %1198 = vmatmul.msk.bf16.vlgmr.msra.gmra.mxu0 %vm324_vm11, %v876_v24  ;;  %1199 = vmatmul.msk.bf16.vlgmr.msra.gmra.mxu1 %vm324_vm11, %v876_v24 }
 0xbf9   :  { %v889_v31 = vpop.f32.mrf.mxu0  ;;  %v902_v33 = vpop.f32.mrf.mxu1 }
 0xbfa   :  { %v906_v6 = vadd.f32 %v889_v31, %v874_v32  ;;  %v907_v34 = vadd.f32 %v902_v33, %v875_v30 }
 0xbfc   :  { %1304 = vtanh.f32 %v907_v34  ;;  %v1200_v47 = vmul.f32 -1.442695, %v906_v6  ;;  %v1201_v59 = vmul.f32 -1.442695, %v907_v34  ;;  %v1064_v34 = vld [vmem:[#allocation9 + $0x38] sm:$0xff] }
 0xbfd   :  { %1080 = vmatpush.msrb.mxu0 %v1064_v34 }
 0xbfe   :  { %1306 = vpow2.f32 %v1200_v47  ;;  %v1060_v47 = vld [vmem:[#allocation9 + $0x18] sm:$0xff] }
 0xc01   :  { %v891_v44 = vpop.f32.mrf.mxu0  ;;  %v904_v45 = vpop.f32.mrf.mxu1 }
 0xc02   :  { %v1305_v46 = vpop.eup %1304  ;;  %v1063_v44 = vld [vmem:[#allocation9 + $0x30] sm:$0xff]  ;;  %v1062_v45 = vld [vmem:[#allocation9 + $0x28] sm:$0xff] }
 0xc03   :  { %949 = vrot.lane.b32.xlu0 %v1305_v46, %s1460_s9  ;;  %1081 = vmatpush.msrb.mxu0 %v1063_v44  ;;  %v1061_v46 = vld [vmem:[#allocation9 + $0x20] sm:$0xff] }
 0xc04   :  { %v1307_v48 = vpop.eup %1306 }
 0xc05   :  { %v914_v49 = vadd.f32 1.0, %v1307_v48  ;;  %1082 = vmatpush.msrb.mxu0 %v1062_v45  ;;  %v1059_v48 = vld [vmem:[#allocation9 + $0x10] sm:$0xff] }
 0xc07   :  { %1308 = vrcp.f32 %v914_v49  ;;  %v927_v35 = vand.u32 2147483648, %v914_v49  ;;  %vm921_vm7 = vweird.f32 %v914_v49  ;;  %v925_v38 = vand.u32 2147483647, %v914_v49  ;;  %1083 = vmatpush.msrb.mxu0 %v1061_v46 }
 0xc09   :  { %v928_v54 = vor.u32 1.1754944e-38, %v927_v35  ;;  %vm926_vm9 = vcmp.eq.f32.partialorder %v925_v38, 8.507059e+37  ;;  %1084 = vmatpush.msrb.mxu0 %v1060_v47  ;;  %v1058_v38 = vld [vmem:[#allocation9 + $0x8] sm:$0xff] }
 0xc0b   :  { %1085 = vmatpush.msrb.mxu0 %v1059_v48 }
 0xc0d   :  { %v1309_v41 = vpop.eup %1308  ;;  %1086 = vmatpush.msrb.mxu0 %v1058_v38 }
 0xc0e   :  { %v917_v50 = vmul.f32 %v1309_v41, %v914_v49  ;;  %vm922_vm6 = vweird.f32 %v1309_v41 }
 0xc0f   :  { %vm923_vm8 = vmor %vm921_vm7, %vm922_vm6 }
 0xc10   :  { %v918_v43 = vsub.f32 1.0, %v917_v50 }
 0xc12   :  { %v919_v52 = vmul.f32 %v1309_v41, %v918_v43 }
 0xc14   :  { %v920_v40 = vadd.f32 %v1309_v41, %v919_v52 }
 0xc16   :  { %v924_v22 = vsel %vm923_vm8, %v1309_v41, %v920_v40 }
 0xc17   :  { %v929_v39 = vsel %vm926_vm9, %v928_v54, %v924_v22  ;;  %v1057_v22 = vld [vmem:[#allocation9] sm:$0xff] }
 0xc18   :  { %v947_v56 = vmul.f32 %v929_v39, %v865_v13  ;;  %1087 = vmatpush.msrb.mxu0 %v1057_v22 }
 0xc75   :  { %v950_v36 = vpop.permute.xlu0 %949 }
 0xc76   :  { %v952_v55 = vmul.f32 %v950_v36, %v929_v39 }
 0xc78   :  { %954 = vrot.lane.b32.xlu1 %v952_v55, %s1460_s9 }
 0xcea   :  { %v955_v37 = vpop.permute.xlu1 %954 }
 0xceb   :  { %v1737_v57 = vadd.f32 %v955_v37, %v947_v56 }
 0xced   :  { %1310 = vtanh.f32 %v1737_v57 }
 0xcee   :  { %1312 = vpow2.f32 %v1201_v59 }
 0xcf3   :  { %v1311_v58 = vpop.eup %1310 }
 0xcf4   :  { %960 = vrot.lane.b32.xlu2 %v1311_v58, %s1460_s9  ;;  %v1313_v61 = vpop.eup %1312 }
 0xcf5   :  { %v915_v62 = vadd.f32 1.0, %v1313_v61 }
 0xcf7   :  { %1314 = vrcp.f32 %v915_v62  ;;  %v942_v2 = vand.u32 2147483648, %v915_v62  ;;  %vm936_vm12 = vweird.f32 %v915_v62  ;;  %v940_v3 = vand.u32 2147483647, %v915_v62 }
 0xcf9   :  { %v943_v5 = vor.u32 1.1754944e-38, %v942_v2  ;;  %vm941_vm14 = vcmp.eq.f32.partialorder %v940_v3, 8.507059e+37 }
 0xcfd   :  { %v1315_v63 = vpop.eup %1314 }
 0xcfe   :  { %v932_v0 = vmul.f32 %v1315_v63, %v915_v62  ;;  %vm937_vm10 = vweird.f32 %v1315_v63 }
 0xcff   :  { %vm938_vm13 = vmor %vm936_vm12, %vm937_vm10 }
 0xd00   :  { %v933_v1 = vsub.f32 1.0, %v932_v0 }
 0xd02   :  { %v934_v23 = vmul.f32 %v1315_v63, %v933_v1  ;;  %v1231_v1 = vld [vmem:[%s1765_s5] ss:$0 sm:$0xff] }
 0xd04   :  { %v935_v51 = vadd.f32 %v1315_v63, %v934_v23 }
 0xd06   :  { %v939_v4 = vsel %vm938_vm13, %v1315_v63, %v935_v51 }
 0xd07   :  { %v944_v60 = vsel %vm941_vm14, %v943_v5, %v939_v4 }
 0xd4e   :  { %v961_v8 = vpop.permute.xlu2 %960 }
 0xd4f   :  { %v963_v11 = vmul.f32 %v961_v8, %v944_v60 }
 0xd51   :  { %v1742_v12 = vadd.f32 %v963_v11, %v1729_v28  ;;  %v968_v13 = vpack.c.bf16 %v963_v11, %v963_v11 }
 0xd53   :  { %1202 = vmatmul.msk.bf16.vlgmr.msrb.gmra.mxu2 %vm324_vm11, %v968_v13  ;;  %1203 = vmatmul.msk.bf16.vlgmr.msrb.gmra.mxu3 %vm324_vm11, %v968_v13 }
 0xdd6   :  { %v981_v17 = vpop.f32.mrf.mxu2  ;;  %v994_v18 = vpop.f32.mrf.mxu3 }
 0xdd7   :  { %v998_v19 = vadd.f32 %v981_v17, %v966_v16  ;;  %v999_v42 = vadd.f32 %v994_v18, %v967_v10 }
 0xdd9   :  { %1316 = vtanh.f32 %v999_v42  ;;  %v1204_v9 = vmul.f32 -1.442695, %v998_v19  ;;  %v1205_v52 = vmul.f32 -1.442695, %v999_v42 }
 0xddb   :  { %1318 = vpow2.f32 %v1204_v9 }
 0xdde   :  { %v983_v7 = vpop.f32.mrf.mxu2  ;;  %v996_v25 = vpop.f32.mrf.mxu3 }
 0xddf   :  { %v1317_v26 = vpop.eup %1316 }
 0xde0   :  { %1041 = vrot.lane.b32.xlu0 %v1317_v26, %s1460_s9 }
 0xde1   :  { %v1319_v27 = vpop.eup %1318 }
 0xde2   :  { %v1006_v15 = vadd.f32 1.0, %v1319_v27 }
 0xde4   :  { %1320 = vrcp.f32 %v1006_v15  ;;  %v1019_v28 = vand.u32 2147483648, %v1006_v15  ;;  %vm1013_vm0 = vweird.f32 %v1006_v15  ;;  %v1017_v24 = vand.u32 2147483647, %v1006_v15 }
 0xde6   :  { %v1020_v30 = vor.u32 1.1754944e-38, %v1019_v28  ;;  %vm1018_vm2 = vcmp.eq.f32.partialorder %v1017_v24, 8.507059e+37 }
 0xdea   :  { %v1321_v14 = vpop.eup %1320 }
 0xdeb   :  { %v1009_v29 = vmul.f32 %v1321_v14, %v1006_v15  ;;  %vm1014_vm15 = vweird.f32 %v1321_v14 }
 0xdec   :  { %vm1015_vm1 = vmor %vm1013_vm0, %vm1014_vm15 }
 0xded   :  { %v1010_v20 = vsub.f32 1.0, %v1009_v29 }
 0xdef   :  { %v1011_v21 = vmul.f32 %v1321_v14, %v1010_v20 }
 0xdf1   :  { %v1012_v53 = vadd.f32 %v1321_v14, %v1011_v21 }
 0xdf3   :  { %v1016_v32 = vsel %vm1015_vm1, %v1321_v14, %v1012_v53 }
 0xdf4   :  { %v1021_v33 = vsel %vm1018_vm2, %v1020_v30, %v1016_v32 }
 0xdf5   :  { %v1039_v49 = vmul.f32 %v1021_v33, %v1737_v57 }
 0xe52   :  { %v1042_v31 = vpop.permute.xlu0 %1041 }
 0xe53   :  { %v1044_v6 = vmul.f32 %v1042_v31, %v1021_v33 }
 0xe55   :  { %1046 = vrot.lane.b32.xlu1 %v1044_v6, %s1460_s9 }
 0xec7   :  { %v1047_v41 = vpop.permute.xlu1 %1046 }
 0xec8   :  { %v1049_v50 = vadd.f32 %v1047_v41, %v1039_v49 }
 0xeca   :  { %1322 = vtanh.f32 %v1049_v50 }
 0xecb   :  { %1324 = vpow2.f32 %v1205_v52 }
 0xed0   :  { %v1323_v43 = vpop.eup %1322 }
 0xed1   :  { %1052 = vrot.lane.b32.xlu2 %v1323_v43, %s1460_s9  ;;  %v1325_v40 = vpop.eup %1324 }
 0xed2   :  { %v1007_v35 = vadd.f32 1.0, %v1325_v40 }
 0xed4   :  { %1326 = vrcp.f32 %v1007_v35  ;;  %v1034_v37 = vand.u32 2147483648, %v1007_v35  ;;  %vm1028_vm4 = vweird.f32 %v1007_v35  ;;  %v1032_v57 = vand.u32 2147483647, %v1007_v35 }
 0xed6   :  { %v1035_v59 = vor.u32 1.1754944e-38, %v1034_v37  ;;  %vm1033_vm6 = vcmp.eq.f32.partialorder %v1032_v57, 8.507059e+37 }
 0xeda   :  { %v1327_v54 = vpop.eup %1326 }
 0xedb   :  { %v1024_v36 = vmul.f32 %v1327_v54, %v1007_v35  ;;  %vm1029_vm3 = vweird.f32 %v1327_v54 }
 0xedc   :  { %vm1030_vm5 = vmor %vm1028_vm4, %vm1029_vm3 }
 0xedd   :  { %v1025_v39 = vsub.f32 1.0, %v1024_v36 }
 0xedf   :  { %v1026_v55 = vmul.f32 %v1327_v54, %v1025_v39 }
 0xee1   :  { %v1027_v56 = vadd.f32 %v1327_v54, %v1026_v55 }
 0xee3   :  { %v1031_v58 = vsel %vm1030_vm5, %v1327_v54, %v1027_v56 }
 0xee4   :  { %v1036_v61 = vsel %vm1033_vm6, %v1035_v59, %v1031_v58 }
 0xf2b   :  { %v1053_v62 = vpop.permute.xlu2 %1052 }
 0xf2c   :  { %v1055_v63 = vmul.f32 %v1053_v62, %v1036_v61 }
 0xf2e   :  { %v1056_v0 = vadd.f32 %v1055_v63, %v1742_v12 }
 0xf30   :  { %1206 = vmatmul.msk.f32.vlgmr.msrb.gmra.mxu0 %vm324_vm11, %v1056_v0 }
 0xfad   :  { %v1089_v23 = vpop.f32.mrf.mxu0 }
 0xfae   :  { %v1090_v51 = vadd.f32 %v1231_v1, %v1089_v23 }
 0xfb0   :  { %1092 = vst [vmem:[#allocation11] sm:$0xff] %v1090_v51 }
 0xfb1   :  { %1103 = dma.vmem_to_hbm [thread:$0]  %s1099_s21, 128, %s1101_s24, [#allocation5]  }
 0xfb2   :  { %1454 = dma.done.wait [#allocation5], 128  }
 0xfb3   :  { %1455 = vsyncadd [#allocation5], 4294967168 }
 0xfb4   :  { %1108 = vsyncpa [#allocation4], 1 }
 0xfb5   :  { %1109 = vsyncpa [#allocation7], 1 }
 0xfb6   :  { %1110 = vsyncpa [#allocation10], 1 }
 0xfb7   :  { %1111 = vsyncpa [#allocation5], 1 }

</bundles_post_ra>
